<compile_context>
chip_gen: v7x
topology: tpu7x:2x2x1
jax: 0.10.0
libtpu: 0.0.40
codegen_flags: <defaults>
</compile_context>

<pallas_src>
import functools

import jax
import jax.numpy as jnp
from jax import lax
from jax.experimental import pallas as pl
from jax.experimental.pallas import tpu as pltpu


# ---------------------------------------------------------------------------
# Fused kernel: one (image n, row-tile r) step.
# ---------------------------------------------------------------------------
def _bottleneck_kernel(x_ref, s1_ref, b1_ref, w1_ref, s2_ref, b2_ref, w2s_ref,
                       o_ref, *, W, Wp, TH, cd):
    Cmid = w1_ref.shape[1]
    G = w2s_ref.shape[-1]
    r = pl.program_id(1)
    R = pl.num_programs(1)
    Q = TH * Wp                     # output pixels in this tile
    M = (TH + 2) * Wp               # pixels incl. the 1-row halo on each side

    # ---- one contiguous, sublane-aligned window of the padded image --------
    start = pl.multiple_of(r * Q, Q)
    xs = x_ref[0, pl.ds(start, M), :]                          # (M, Cin) cd

    # ---- stage 1: relu(bn1(x)) @ W1 -> relu(bn2(.))  (1x1 conv == matmul) --
    a1 = jnp.maximum(xs.astype(jnp.float32) * s1_ref[...] + b1_ref[...], 0.0)
    h = jnp.dot(a1.astype(cd), w1_ref[...],
                preferred_element_type=jnp.float32)            # (M, Cmid) f32
    h = jnp.maximum(h * s2_ref[...] + b2_ref[...], 0.0)

    # Zero the halo rows that lie outside the image (conv2's zero pad in H).
    row = lax.broadcasted_iota(jnp.int32, (M, 1), 0)
    pad_top = jnp.logical_and(row < Wp, r == 0)
    pad_bot = jnp.logical_and(row >= (TH + 1) * Wp, r == R - 1)
    h = jnp.where(jnp.logical_or(pad_top, pad_bot), 0.0, h)

    # ---- 3x3 conv: lane-concat of the 3 dx shifts, then 3 dy matmuls -------
    col = row % Wp
    not_left = (col != 0).astype(jnp.float32)        # kill dx=-1 wrap at col 0
    not_right = (col != W - 1).astype(jnp.float32)   # zero-pad at right edge
    h_l = pltpu.roll(h, 1, axis=0) * not_left        # h[q-1]  (dx = 0 tap)
    h_r = pltpu.roll(h, M - 1, axis=0) * not_right   # h[q+1]  (dx = 2 tap)
    h3 = jnp.concatenate(
        [h_l.astype(cd), h.astype(cd), h_r.astype(cd)], axis=-1)  # (M, 3Cmid)

    acc = jnp.zeros((Q, G), jnp.float32)
    for dy in range(3):                              # W-aligned row offsets
        acc = acc + jnp.dot(h3[dy * Wp:dy * Wp + Q, :], w2s_ref[dy],
                            preferred_element_type=jnp.float32)

    # ---- [conv_out | x] written as ONE full-width lane-dense store ---------
    x_mid = xs[Wp:Wp + Q, :]
    o_ref[0, :, :] = jnp.concatenate(
        [acc.astype(o_ref.dtype), x_mid.astype(o_ref.dtype)], axis=-1)


# ---------------------------------------------------------------------------
# Row-tile selection with a rough VMEM budget (keeps v7x's 64 MiB happy).
# ---------------------------------------------------------------------------
def _pick_row_tile(H, Wp, Cin, Cmid, G, *, max_rows=64, budget=40 << 20):
    def est(th):
        m, q = (th + 2) * Wp, th * Wp
        x_blk = 2 * (H + 2) * Wp * Cin * 4          # double-buffered input
        out_blk = 2 * q * (G + Cin) * 4             # double-buffered output
        inter = m * (Cin + Cmid) * 4 + m * 3 * Cmid * 6 + q * G * 8
        return x_blk + out_blk + inter

    for th in range(min(H, max_rows), 1, -1):
        if H % th == 0 and H // th >= 2 and est(th) <= budget:
            return th
    return H                                        # single-tile fallback


# ---------------------------------------------------------------------------
# Bottleneck wrapper (NCHW in / NCHW out, PyTorch weight layouts)
#   params: gamma1/beta1/mean1/var1 (Cin,), conv1_w (Cmid,Cin,1,1),
#           gamma2/beta2/mean2/var2 (Cmid,), conv2_w (G,Cmid,3,3)
# ---------------------------------------------------------------------------
def bottleneck_forward(x_nchw, params, *, row_tile=None,
                       compute_dtype=jnp.bfloat16):
    N, Cin, H, W = x_nchw.shape
    assert H >= 2, "3x3 conv block expects H >= 2"
    Cmid = params["conv1_w"].shape[0]
    G = params["conv2_w"].shape[0]

    # Fold eval-mode BatchNorm into scale/shift (f32 vector math stays f32).
    eps = 1e-5
    s1 = (params["gamma1"] / jnp.sqrt(params["var1"] + eps)).astype(jnp.float32)
    b1 = (params["beta1"] - params["mean1"] * s1).astype(jnp.float32)
    s2 = (params["gamma2"] / jnp.sqrt(params["var2"] + eps)).astype(jnp.float32)
    b2 = (params["beta2"] - params["mean2"] * s2).astype(jnp.float32)

    # conv1: (Cmid, Cin, 1, 1) -> (Cin, Cmid) matmul form.
    w1 = jnp.transpose(params["conv1_w"].reshape(Cmid, Cin), (1, 0))
    w1 = w1.astype(compute_dtype)
    # conv2: (G, Cmid, 3, 3) -> per-dy stacked (3, 3*Cmid, G); rows ordered
    # [dx=0 block | dx=1 block | dx=2 block] to match the h3 lane concat.
    w2s = jnp.transpose(params["conv2_w"], (2, 3, 1, 0)).reshape(3, 3 * Cmid, G)
    w2s = w2s.astype(compute_dtype)

    # Pad width to a multiple of 8 (sublane alignment for the 28/14/7 stages)
    # and add ONE zero halo row above/below each image, then flatten pixels.
    Wp = ((W + 7) // 8) * 8
    x = jnp.transpose(x_nchw, (0, 2, 3, 1))                     # NHWC
    if Wp != W:
        x = jnp.pad(x, ((0, 0), (0, 0), (0, Wp - W), (0, 0)))
    x = jnp.pad(x, ((0, 0), (1, 1), (0, 0), (0, 0)))
    x_flat = x.reshape(N, (H + 2) * Wp, Cin).astype(compute_dtype)

    TH = row_tile if row_tile is not None else _pick_row_tile(H, Wp, Cin,
                                                              Cmid, G)
    assert H % TH == 0, (H, TH)
    R = H // TH
    Q = TH * Wp

    kern = functools.partial(_bottleneck_kernel, W=W, Wp=Wp, TH=TH,
                             cd=compute_dtype)
    out_flat = pl.pallas_call(
        kern,
        out_shape=jax.ShapeDtypeStruct((N, H * Wp, G + Cin), compute_dtype),
        grid_spec=pltpu.PrefetchScalarGridSpec(
            num_scalar_prefetch=0,
            grid=(N, R),
            in_specs=[
                # full padded image stays VMEM-resident across the row axis
                pl.BlockSpec((1, (H + 2) * Wp, Cin), lambda n, r: (n, 0, 0)),
                pl.BlockSpec((1, Cin), lambda n, r: (0, 0)),
                pl.BlockSpec((1, Cin), lambda n, r: (0, 0)),
                pl.BlockSpec((Cin, Cmid), lambda n, r: (0, 0)),
                pl.BlockSpec((1, Cmid), lambda n, r: (0, 0)),
                pl.BlockSpec((1, Cmid), lambda n, r: (0, 0)),
                pl.BlockSpec((3, 3 * Cmid, G), lambda n, r: (0, 0, 0)),
            ],
            out_specs=pl.BlockSpec((1, Q, G + Cin), lambda n, r: (n, r, 0)),
        ),
        compiler_params=pltpu.CompilerParams(
            dimension_semantics=("parallel", "parallel"),
            vmem_limit_bytes=64 * 1024 * 1024),
    )(x_flat, s1.reshape(1, Cin), b1.reshape(1, Cin), w1,
      s2.reshape(1, Cmid), b2.reshape(1, Cmid), w2s)

    # flattened (padded) NHWC -> NCHW; drop the padded columns.
    out = out_flat.reshape(N, H, Wp, G + Cin)
    if Wp != W:
        out = out[:, :, :W, :]
    return jnp.transpose(out, (0, 3, 1, 2))


# ---------------------------------------------------------------------------
# Pure-JAX reference (for verification)
# ---------------------------------------------------------------------------
def reference_forward(x_nchw, params):
    eps = 1e-5
    x = jnp.transpose(x_nchw, (0, 2, 3, 1)).astype(jnp.float32)
    cmid, cin = params["conv1_w"].shape[:2]
    s1 = params["gamma1"] / jnp.sqrt(params["var1"] + eps)
    b1 = params["beta1"] - params["mean1"] * s1
    s2 = params["gamma2"] / jnp.sqrt(params["var2"] + eps)
    b2 = params["beta2"] - params["mean2"] * s2

    h = jnp.maximum(x * s1 + b1, 0.0)
    h = jnp.einsum("nhwc,cd->nhwd", h, params["conv1_w"].reshape(cmid, cin).T)
    h = jnp.maximum(h * s2 + b2, 0.0)

    w2_hwio = jnp.transpose(params["conv2_w"], (2, 3, 1, 0))    # (3,3,Cmid,G)
    y = lax.conv_general_dilated(
        h, w2_hwio, window_strides=(1, 1), padding="SAME",
        dimension_numbers=("NHWC", "HWIO", "NHWC"))
    out = jnp.concatenate([y, x], axis=-1)
    return jnp.transpose(out, (0, 3, 1, 2))


# ---------------------------------------------------------------------------
# Self-test
# ---------------------------------------------------------------------------
def _make_params(key, cin, growth):
    cmid = 4 * growth
    k = jax.random.split(key, 10)
    return dict(
        gamma1=jax.random.normal(k[0], (cin,), jnp.float32) * 0.1 + 1.0,
        beta1=jax.random.normal(k[1], (cin,), jnp.float32) * 0.1,
        mean1=jax.random.normal(k[2], (cin,), jnp.float32) * 0.1,
        var1=jnp.abs(jax.random.normal(k[3], (cin,), jnp.float32)) * 0.1 + 1.0,
        conv1_w=jax.random.normal(k[4], (cmid, cin, 1, 1), jnp.float32) * 0.2,
        gamma2=jax.random.normal(k[5], (cmid,), jnp.float32) * 0.1 + 1.0,
        beta2=jax.random.normal(k[6], (cmid,), jnp.float32) * 0.1,
        mean2=jax.random.normal(k[7], (cmid,), jnp.float32) * 0.1,
        var2=jnp.abs(jax.random.normal(k[8], (cmid,), jnp.float32)) * 0.1 + 1.0,
        conv2_w=jax.random.normal(k[9], (growth, cmid, 3, 3), jnp.float32) * 0.1,
    )


if __name__ == "__main__":
    # Main shapes: N=2, in_channels=4, H=W=16, growth_rate=4 (conv1 width 16).
    N, Cin, H, W, growth = 2, 4, 16, 16, 4
    kx, kp = jax.random.split(jax.random.PRNGKey(0))
    x = jax.random.normal(kx, (N, Cin, H, W), jnp.float32)
    params = _make_params(kp, Cin, growth)
    ref = reference_forward(x, params)

    # 1) f32 path: exact-math check.
    out32 = jax.block_until_ready(
        bottleneck_forward(x, params, compute_dtype=jnp.float32))
    assert out32.shape == (N, growth + Cin, H, W), out32.shape
    assert jnp.allclose(out32, ref, atol=2e-4, rtol=2e-4), \
        float(jnp.max(jnp.abs(out32 - ref)))

    # 2) bf16 fast path (HBM traffic + MXU operands in bf16, f32 accumulate).
    out16 = jax.block_until_ready(
        bottleneck_forward(x, params, compute_dtype=jnp.bfloat16))
    assert out16.shape == (N, growth + Cin, H, W), out16.shape
    assert jnp.allclose(out16.astype(jnp.float32), ref, atol=6e-2, rtol=6e-2), \
        float(jnp.max(jnp.abs(out16.astype(jnp.float32) - ref)))

    # 3) W not a multiple of 8 (DenseNet 14x14 stage) exercises width padding.
    kx2, kp2 = jax.random.split(jax.random.PRNGKey(1))
    x2 = jax.random.normal(kx2, (1, 8, 14, 14), jnp.float32)
    p2 = _make_params(kp2, 8, 4)
    out2 = jax.block_until_ready(
        bottleneck_forward(x2, p2, compute_dtype=jnp.float32))
    ref2 = reference_forward(x2, p2)
    assert out2.shape == ref2.shape, (out2.shape, ref2.shape)
    assert jnp.allclose(out2, ref2, atol=2e-4, rtol=2e-4), \
        float(jnp.max(jnp.abs(out2 - ref2)))

    print("KERNEL_OK")
</pallas_src>

<mosaic_0001>
module attributes {stable_mosaic.version = 11 : i64} {
  func.func @_bottleneck_kernel(%arg0: i32, %arg1: i32, %arg2: memref<1x288x4xf32, #tpu.memory_space<vmem>>, %arg3: memref<1x4xf32, #tpu.memory_space<vmem>>, %arg4: memref<1x4xf32, #tpu.memory_space<vmem>>, %arg5: memref<4x16xf32, #tpu.memory_space<vmem>>, %arg6: memref<1x16xf32, #tpu.memory_space<vmem>>, %arg7: memref<1x16xf32, #tpu.memory_space<vmem>>, %arg8: memref<3x48x4xf32, #tpu.memory_space<vmem>>, %arg9: memref<1x128x8xf32, #tpu.memory_space<vmem>>) attributes {dimension_semantics = [#tpu.dimension_semantics<parallel>, #tpu.dimension_semantics<parallel>], iteration_bounds = array<i64: 2, 2>, scalar_prefetch = 0 : i64, scratch_operands = 0 : i64, tpu.core_type = #tpu.core_type<tc>, window_params = [{transform_indices = @transform_0, window_bounds = array<i64: 1, 288, 4>}, {pipeline_mode = #tpu.pipeline_mode<synchronous>, transform_indices = @transform_1, window_bounds = array<i64: 1, 4>}, {pipeline_mode = #tpu.pipeline_mode<synchronous>, transform_indices = @transform_2, window_bounds = array<i64: 1, 4>}, {pipeline_mode = #tpu.pipeline_mode<synchronous>, transform_indices = @transform_3, window_bounds = array<i64: 4, 16>}, {pipeline_mode = #tpu.pipeline_mode<synchronous>, transform_indices = @transform_4, window_bounds = array<i64: 1, 16>}, {pipeline_mode = #tpu.pipeline_mode<synchronous>, transform_indices = @transform_5, window_bounds = array<i64: 1, 16>}, {pipeline_mode = #tpu.pipeline_mode<synchronous>, transform_indices = @transform_6, window_bounds = array<i64: 3, 48, 4>}, {transform_indices = @transform_7, window_bounds = array<i64: 1, 128, 8>}]} {
    %c128_i32 = arith.constant 128 : i32
    %0 = arith.muli %arg1, %c128_i32 : i32
    %1 = tpu.assume_multiple %0, 128 : i32
    %c0 = arith.constant 0 : index
    %2 = arith.index_cast %1 : i32 to index
    %c0_0 = arith.constant 0 : index
    %3 = vector.load %arg2[%c0, %2, %c0_0] : memref<1x288x4xf32, #tpu.memory_space<vmem>>, vector<1x160x4xf32>
    %4 = vector.shape_cast %3 : vector<1x160x4xf32> to vector<160x4xf32>
    %c0_1 = arith.constant 0 : index
    %c0_2 = arith.constant 0 : index
    %5 = vector.load %arg3[%c0_1, %c0_2] : memref<1x4xf32, #tpu.memory_space<vmem>>, vector<1x4xf32>
    %6 = vector.broadcast %5 : vector<1x4xf32> to vector<160x4xf32>
    %7 = arith.mulf %4, %6 : vector<160x4xf32>
    %c0_3 = arith.constant 0 : index
    %c0_4 = arith.constant 0 : index
    %8 = vector.load %arg4[%c0_3, %c0_4] : memref<1x4xf32, #tpu.memory_space<vmem>>, vector<1x4xf32>
    %9 = vector.broadcast %8 : vector<1x4xf32> to vector<160x4xf32>
    %10 = arith.addf %7, %9 : vector<160x4xf32>
    %cst = arith.constant 0.000000e+00 : f32
    %11 = vector.broadcast %cst : f32 to vector<160x4xf32>
    %12 = arith.maximumf %10, %11 : vector<160x4xf32>
    %c0_5 = arith.constant 0 : index
    %c0_6 = arith.constant 0 : index
    %13 = vector.load %arg5[%c0_5, %c0_6] : memref<4x16xf32, #tpu.memory_space<vmem>>, vector<4x16xf32>
    %cst_7 = arith.constant dense<0.000000e+00> : vector<160x16xf32>
    %14 = tpu.matmul %12, %13, %cst_7 {dimension_numbers = #tpu.dot_dimension_numbers<[1], [0], [0], [1], [0, 0, 1, 1], [], []>} : vector<160x4xf32>, vector<4x16xf32>, vector<160x16xf32> -> vector<160x16xf32>
    %c0_8 = arith.constant 0 : index
    %c0_9 = arith.constant 0 : index
    %15 = vector.load %arg6[%c0_8, %c0_9] : memref<1x16xf32, #tpu.memory_space<vmem>>, vector<1x16xf32>
    %16 = vector.broadcast %15 : vector<1x16xf32> to vector<160x16xf32>
    %17 = arith.mulf %14, %16 : vector<160x16xf32>
    %c0_10 = arith.constant 0 : index
    %c0_11 = arith.constant 0 : index
    %18 = vector.load %arg7[%c0_10, %c0_11] : memref<1x16xf32, #tpu.memory_space<vmem>>, vector<1x16xf32>
    %19 = vector.broadcast %18 : vector<1x16xf32> to vector<160x16xf32>
    %20 = arith.addf %17, %19 : vector<160x16xf32>
    %cst_12 = arith.constant 0.000000e+00 : f32
    %21 = vector.broadcast %cst_12 : f32 to vector<160x16xf32>
    %22 = arith.maximumf %20, %21 : vector<160x16xf32>
    %23 = tpu.iota {dimensions = array<i32: 0>} : vector<160x1xi32>
    %c16_i32 = arith.constant 16 : i32
    %24 = vector.broadcast %c16_i32 : i32 to vector<160x1xi32>
    %25 = arith.cmpi slt, %23, %24 : vector<160x1xi32>
    %c0_i32 = arith.constant 0 : i32
    %26 = arith.cmpi eq, %arg1, %c0_i32 : i32
    %27 = vector.broadcast %26 : i1 to vector<160x1xi1>
    %28 = arith.andi %25, %27 : vector<160x1xi1>
    %c144_i32 = arith.constant 144 : i32
    %29 = vector.broadcast %c144_i32 : i32 to vector<160x1xi32>
    %30 = arith.cmpi sge, %23, %29 : vector<160x1xi32>
    %c1_i32 = arith.constant 1 : i32
    %31 = arith.cmpi eq, %arg1, %c1_i32 : i32
    %32 = vector.broadcast %31 : i1 to vector<160x1xi1>
    %33 = arith.andi %30, %32 : vector<160x1xi1>
    %34 = arith.ori %28, %33 : vector<160x1xi1>
    %cst_13 = arith.constant 0.000000e+00 : f32
    %35 = vector.shape_cast %34 : vector<160x1xi1> to vector<160x1xi1>
    %36 = vector.broadcast %35 : vector<160x1xi1> to vector<160x16xi1>
    %37 = vector.broadcast %cst_13 : f32 to vector<160x16xf32>
    %38 = arith.select %36, %37, %22 : vector<160x16xi1>, vector<160x16xf32>
    %c16_i32_14 = arith.constant 16 : i32
    %c0_i32_15 = arith.constant 0 : i32
    %39 = arith.cmpi eq, %c16_i32_14, %c0_i32_15 : i32
    %c1_i32_16 = arith.constant 1 : i32
    %40 = arith.select %39, %c1_i32_16, %c16_i32_14 : i32
    %41 = vector.broadcast %40 : i32 to vector<160x1xi32>
    %42 = arith.remsi %23, %41 : vector<160x1xi32>
    %c0_i32_17 = arith.constant 0 : i32
    %43 = vector.broadcast %c0_i32_17 : i32 to vector<160x1xi32>
    %44 = arith.cmpi ne, %42, %43 : vector<160x1xi32>
    %c0_i32_18 = arith.constant 0 : i32
    %45 = vector.broadcast %c0_i32_18 : i32 to vector<160x1xi32>
    %46 = arith.cmpi slt, %42, %45 : vector<160x1xi32>
    %c0_i32_19 = arith.constant 0 : i32
    %47 = arith.cmpi slt, %40, %c0_i32_19 : i32
    %48 = vector.broadcast %47 : i1 to vector<160x1xi1>
    %49 = vector.broadcast %48 : vector<160x1xi1> to vector<160x1xi1>
    %50 = arith.xori %46, %49 : vector<160x1xi1>
    %51 = arith.andi %50, %44 : vector<160x1xi1>
    %52 = vector.broadcast %40 : i32 to vector<160x1xi32>
    %53 = arith.addi %42, %52 : vector<160x1xi32>
    %54 = arith.select %51, %53, %42 : vector<160x1xi1>, vector<160x1xi32>
    %c0_i32_20 = arith.constant 0 : i32
    %55 = vector.broadcast %c0_i32_20 : i32 to vector<160x1xi32>
    %56 = arith.cmpi ne, %54, %55 : vector<160x1xi32>
    %57 = arith.extui %56 : vector<160x1xi1> to vector<160x1xi32>
    %58 = arith.sitofp %57 : vector<160x1xi32> to vector<160x1xf32>
    %c15_i32 = arith.constant 15 : i32
    %59 = vector.broadcast %c15_i32 : i32 to vector<160x1xi32>
    %60 = arith.cmpi ne, %54, %59 : vector<160x1xi32>
    %61 = arith.extui %60 : vector<160x1xi1> to vector<160x1xi32>
    %62 = arith.sitofp %61 : vector<160x1xi32> to vector<160x1xf32>
    %c1_i32_21 = arith.constant 1 : i32
    %63 = tpu.dynamic_rotate %38 by %c1_i32_21 dim 0 : vector<160x16xf32>, i32 -> vector<160x16xf32>
    %64 = vector.broadcast %58 : vector<160x1xf32> to vector<160x16xf32>
    %65 = arith.mulf %63, %64 : vector<160x16xf32>
    %c159_i32 = arith.constant 159 : i32
    %66 = tpu.dynamic_rotate %38 by %c159_i32 dim 0 : vector<160x16xf32>, i32 -> vector<160x16xf32>
    %67 = vector.broadcast %62 : vector<160x1xf32> to vector<160x16xf32>
    %68 = arith.mulf %66, %67 : vector<160x16xf32>
    %69 = tpu.concatenate %65, %38, %68 in 1 : vector<160x16xf32>, vector<160x16xf32>, vector<160x16xf32> -> vector<160x48xf32>
    %cst_22 = arith.constant 0.000000e+00 : f32
    %70 = vector.broadcast %cst_22 : f32 to vector<128x4xf32>
    %71 = vector.extract_strided_slice %69 {offsets = [0, 0], sizes = [128, 48], strides = [1, 1]} : vector<160x48xf32> to vector<128x48xf32>
    %c0_23 = arith.constant 0 : index
    %c0_24 = arith.constant 0 : index
    %c0_25 = arith.constant 0 : index
    %72 = vector.load %arg8[%c0_23, %c0_24, %c0_25] : memref<3x48x4xf32, #tpu.memory_space<vmem>>, vector<1x48x4xf32>
    %73 = vector.shape_cast %72 : vector<1x48x4xf32> to vector<48x4xf32>
    %cst_26 = arith.constant dense<0.000000e+00> : vector<128x4xf32>
    %74 = tpu.matmul %71, %73, %cst_26 {dimension_numbers = #tpu.dot_dimension_numbers<[1], [0], [0], [1], [0, 0, 1, 1], [], []>} : vector<128x48xf32>, vector<48x4xf32>, vector<128x4xf32> -> vector<128x4xf32>
    %75 = arith.addf %70, %74 : vector<128x4xf32>
    %76 = vector.extract_strided_slice %69 {offsets = [16, 0], sizes = [128, 48], strides = [1, 1]} : vector<160x48xf32> to vector<128x48xf32>
    %c1 = arith.constant 1 : index
    %c0_27 = arith.constant 0 : index
    %c0_28 = arith.constant 0 : index
    %77 = vector.load %arg8[%c1, %c0_27, %c0_28] : memref<3x48x4xf32, #tpu.memory_space<vmem>>, vector<1x48x4xf32>
    %78 = vector.shape_cast %77 : vector<1x48x4xf32> to vector<48x4xf32>
    %cst_29 = arith.constant dense<0.000000e+00> : vector<128x4xf32>
    %79 = tpu.matmul %76, %78, %cst_29 {dimension_numbers = #tpu.dot_dimension_numbers<[1], [0], [0], [1], [0, 0, 1, 1], [], []>} : vector<128x48xf32>, vector<48x4xf32>, vector<128x4xf32> -> vector<128x4xf32>
    %80 = arith.addf %75, %79 : vector<128x4xf32>
    %81 = vector.extract_strided_slice %69 {offsets = [32, 0], sizes = [128, 48], strides = [1, 1]} : vector<160x48xf32> to vector<128x48xf32>
    %c2 = arith.constant 2 : index
    %c0_30 = arith.constant 0 : index
    %c0_31 = arith.constant 0 : index
    %82 = vector.load %arg8[%c2, %c0_30, %c0_31] : memref<3x48x4xf32, #tpu.memory_space<vmem>>, vector<1x48x4xf32>
    %83 = vector.shape_cast %82 : vector<1x48x4xf32> to vector<48x4xf32>
    %cst_32 = arith.constant dense<0.000000e+00> : vector<128x4xf32>
    %84 = tpu.matmul %81, %83, %cst_32 {dimension_numbers = #tpu.dot_dimension_numbers<[1], [0], [0], [1], [0, 0, 1, 1], [], []>} : vector<128x48xf32>, vector<48x4xf32>, vector<128x4xf32> -> vector<128x4xf32>
    %85 = arith.addf %80, %84 : vector<128x4xf32>
    %86 = vector.extract_strided_slice %4 {offsets = [16, 0], sizes = [128, 4], strides = [1, 1]} : vector<160x4xf32> to vector<128x4xf32>
    %87 = tpu.concatenate %85, %86 in 1 : vector<128x4xf32>, vector<128x4xf32> -> vector<128x8xf32>
    %c0_33 = arith.constant 0 : index
    %c0_34 = arith.constant 0 : index
    %c0_35 = arith.constant 0 : index
    %88 = vector.load %arg9[%c0_33, %c0_34, %c0_35] : memref<1x128x8xf32, #tpu.memory_space<vmem>>, vector<1x128x8xf32>
    %89 = vector.shape_cast %88 : vector<1x128x8xf32> to vector<128x8xf32>
    %90 = vector.shape_cast %87 : vector<128x8xf32> to vector<1x128x8xf32>
    tpu.vector_store %arg9[%c0_33, %c0_34, %c0_35], %90 {strides = array<i32>} : memref<1x128x8xf32, #tpu.memory_space<vmem>>, vector<1x128x8xf32>,
    return
  }
  func.func @transform_0(%arg0: i32, %arg1: i32) -> (i32, i32, i32) {
    %c0_i32 = arith.constant 0 : i32
    %c0_i32_0 = arith.constant 0 : i32
    %c0_i32_1 = arith.constant 0 : i32
    return %arg0, %c0_i32, %c0_i32_0 : i32, i32, i32
  }
  func.func @transform_1(%arg0: i32, %arg1: i32) -> (i32, i32) {
    %c0_i32 = arith.constant 0 : i32
    %c0_i32_0 = arith.constant 0 : i32
    %c0_i32_1 = arith.constant 0 : i32
    return %c0_i32, %c0_i32_0 : i32, i32
  }
  func.func @transform_2(%arg0: i32, %arg1: i32) -> (i32, i32) {
    %c0_i32 = arith.constant 0 : i32
    %c0_i32_0 = arith.constant 0 : i32
    %c0_i32_1 = arith.constant 0 : i32
    return %c0_i32, %c0_i32_0 : i32, i32
  }
  func.func @transform_3(%arg0: i32, %arg1: i32) -> (i32, i32) {
    %c0_i32 = arith.constant 0 : i32
    %c0_i32_0 = arith.constant 0 : i32
    %c0_i32_1 = arith.constant 0 : i32
    return %c0_i32, %c0_i32_0 : i32, i32
  }
  func.func @transform_4(%arg0: i32, %arg1: i32) -> (i32, i32) {
    %c0_i32 = arith.constant 0 : i32
    %c0_i32_0 = arith.constant 0 : i32
    %c0_i32_1 = arith.constant 0 : i32
    return %c0_i32, %c0_i32_0 : i32, i32
  }
  func.func @transform_5(%arg0: i32, %arg1: i32) -> (i32, i32) {
    %c0_i32 = arith.constant 0 : i32
    %c0_i32_0 = arith.constant 0 : i32
    %c0_i32_1 = arith.constant 0 : i32
    return %c0_i32, %c0_i32_0 : i32, i32
  }
  func.func @transform_6(%arg0: i32, %arg1: i32) -> (i32, i32, i32) {
    %c0_i32 = arith.constant 0 : i32
    %c0_i32_0 = arith.constant 0 : i32
    %c0_i32_1 = arith.constant 0 : i32
    %c0_i32_2 = arith.constant 0 : i32
    return %c0_i32, %c0_i32_0, %c0_i32_1 : i32, i32, i32
  }
  func.func @transform_7(%arg0: i32, %arg1: i32) -> (i32, i32, i32) {
    %c0_i32 = arith.constant 0 : i32
    %c0_i32_0 = arith.constant 0 : i32
    return %arg0, %arg1, %c0_i32 : i32, i32, i32
  }
}

</mosaic_0001>

<bundles_post_ra>
// kernel: tpu_custom_call.1
= control target key start
LH: loop header
LB: loop body
LE: loop exit
PB: predicated region body
PF: predicated region fallthrough
CT: control target
= control target key end

     0   :  { %s4651_s0 = inlined_call_operand.hbm [shape: f32[2,288,4], index: 0, kind: input, shape index: {}]   ;;  %s4652_s1 = inlined_call_operand.hbm [shape: f32[1,4], index: 1, kind: input, shape index: {}]   ;;  %s4653_s2 = inlined_call_operand.hbm [shape: f32[1,4], index: 2, kind: input, shape index: {}]   ;;  %s4654_s3 = inlined_call_operand.hbm [shape: f32[4,16], index: 3, kind: input, shape index: {}]   ;;  %s4655_s4 = inlined_call_operand.hbm [shape: f32[1,16], index: 4, kind: input, shape index: {}]   ;;  %s4656_s5 = inlined_call_operand.hbm [shape: f32[1,16], index: 5, kind: input, shape index: {}]   ;;  %s4657_s6 = inlined_call_operand.hbm [shape: f32[3,48,4], index: 6, kind: input, shape index: {}]   ;;  %s4658_s7 = inlined_call_operand.hbm [shape: f32[2,256,8], index: 7, kind: output, shape index: {}]  }
   0x1   :  { %4677 = sst [smem:[#allocation37_spill]] %s4651_s0 }
   0x2   :  { %4678 = sst [smem:[#allocation38_spill]] %s4652_s1 }
   0x3   :  { %4679 = sst [smem:[#allocation39_spill]] %s4653_s2 }
   0x4   :  { %4680 = sst [smem:[#allocation40_spill]] %s4654_s3 }
   0x5   :  { %4681 = sst [smem:[#allocation41_spill]] %s4655_s4 }
   0x6   :  { %4682 = sst [smem:[#allocation42_spill]] %s4656_s5 }
   0x7   :  { %4683 = sst [smem:[#allocation43_spill]] %s4658_s7 }
   0x8   :  { %12 = vsyncpa [#allocation3], 0 }
   0x9   :  { %14 = vsyncpa [#allocation3 + $0x1], 0 }
   0xa   :  { %15 = vsyncpa [#allocation6], 0 }
   0xb   :  { %16 = vsyncpa [#allocation9], 0 }
   0xc   :  { %17 = vsyncpa [#allocation12], 0 }
   0xd   :  { %18 = vsyncpa [#allocation4], 0 }
   0xe   :  { %20 = vsyncpa [#allocation4 + $0x1], 0  ;;  %s3432_s24 = smov 0   ;;  %s3434_s25 = smov 0  }
   0xf   :  { %s3436_s26 = smov 0   ;;  %s3438_s27 = smov 0  }
  0x10   :  { %s3440_s28 = smov 0   ;;  %s3442_s29 = smov 0  }
  0x11   :  { %s3444_s30 = smov 0   ;;  %s3446_s8 = smov 0  }
  0x12   :  { %s3448_s9 = smov 0   ;;  %s3450_s10 = smov 0  }
  0x13   :  { %s3452_s11 = smov 0  }
  0x14 LB: > { %4684 = sst [smem:[#allocation20_spill]] %s3358_s30  ;;  %s2454_s12 = sadd.s32 4294967295, %s3374_s11   ;;  %s3374_s11 = sphi %s3452_s11, %s26_s11   ;;  %s3370_s10 = sphi %s3450_s10, %s4774_s10   ;;  %s3366_s9 = sphi %s3448_s9, %s4773_s9   ;;  %s3362_s8 = sphi %s3446_s8, %s4772_s8   ;;  %s3358_s30 = sphi %s3444_s30, %s4771_s30   ;;  %s3354_s29 = sphi %s3442_s29, %s4770_s29   ;;  %s3350_s28 = sphi %s3440_s28, %s4769_s28   ;;  %s3346_s27 = sphi %s3438_s27, %s4768_s27   ;;  %s3342_s26 = sphi %s3436_s26, %s4767_s26   ;;  %s3338_s25 = sphi %s3434_s25, %s4766_s25   ;;  %s3334_s24 = sphi %s3432_s24, %s4765_s24  }
  0x15   : > { %4685 = sst [smem:[#allocation21_spill]] %s3362_s8  ;;  %p2456_p0 = scmp.ge.s32.totalorder %s3374_s11, 1 }
  0x16   : > { %p3489_p1 = scmp.eq.s32.totalorder %s2454_s12, 0  ;;  %p3493_p2 = scmp.eq.s32.totalorder %s2454_s12, 3 }
  0x17   : > { %p223_p3 = scmp.lt.s32.totalorder %s3374_s11, 5  ;;  %s3376_s16 = smov [#allocation5]  }
  0x18   : > { %s4686_s13 = scalar_select %p3489_p1, 1, 0 }
  0x19   : > { %s4687_s14 = scalar_select %p3493_p2, 1, 0 }
  0x1a   : > { %p3498_p4 = pnand %p2456_p0, %p223_p3  ;;  %s236_s17 = sshll.u32 %s3376_s16, 4  ;;  %s3502_s17 = int_to_ptr.vmem [resolvable:$true] %s236_s17 }
  0x1b   : > { %4688 = sst [smem:[#allocation22_spill]] %s4687_s14  ;;  %s3377_s18 = smov [#allocation8]  }
  0x1c   : > { %s4689_s15 = scalar_select %p3498_p4, 1, 0 }
  0x1d   : > { %p2899_p5 = pneg %p3498_p4  ;;  %s258_s19 = sshll.u32 %s3377_s18, 4  ;;  %s3506_s19 = int_to_ptr.vmem [resolvable:$true] %s258_s19 }
  0x1e   : > { %4690 = sst [smem:[#allocation23_spill]] %s4689_s15  ;;  %s3378_s21 = smov [#allocation11]  }
  0x1f   : > { %p3510_p6 = pnand %p2899_p5, %p3489_p1  ;;  %s280_s22 = sshll.u32 %s3378_s21, 4  ;;  %s3514_s22 = int_to_ptr.vmem [resolvable:$true] %s280_s22 }
  0x20   : > { %s3379_s23 = smov [#allocation7]   ;;  %s4692_s1 = sld [smem:[#allocation38_spill]] }
  0x21   : > { %s3516_s12 = sshll.u32 %s3379_s23, 4  ;;  %p3526_p8 = pneg %p3510_p6  ;;  %s248_s12 = int_to_ptr.vmem [resolvable:$true] %s3516_s12 }
  0x26   : > { %s3042_s8 = scalar_lea.hbm %s4692_s1, 16 }
  0x27   : > { %p3043_p7 = scmp.ne.s32.totalorder %s4692_s1, %s3042_s8  ;;  %p3049_p11 = scmp.lt.u32.totalorder %s3042_s8, %s4692_s1 }
  0x29   : > { %p3045_p9 = pnand %p3526_p8, %p3043_p7 }
  0x2b   : > { %p3046_p10 = pneg %p3045_p9 }
  0x2d   : > { %p3051_p12 = pnand %p3049_p11, %p3046_p10 }
  0x2f   : > { %3054 = shalt.err (!%p3051_p12)
}
  0x30   : > { %s3055_s7 = scalar_lea.vmem %s3502_s17, 16  ;;  %s3062_s30 = scalar_lea.vmem %s3502_s17, 32 }
  0x31   : > { %p3056_p13 = scmp.ne.s32.totalorder %s3502_s17, %s3055_s7  ;;  %p3063_p5 = scmp.lt.s32.totalorder %s3502_s17, %s3502_s17 }
  0x32   : > { %p3064_p7 = scmp.lt.s32.totalorder %s3062_s30, %s3055_s7 }
  0x33   : > { %p3058_p0 = pnand %p3056_p13, %p3526_p8 }
  0x34   : > { %p3065_p9 = por %p3064_p7, %p3063_p5 }
  0x35   : > { %p3059_p3 = pneg %p3058_p0 }
  0x37   : > { %p3066_p4 = pnand %p3065_p9, %p3059_p3 }
  0x39   : > { %3069 = shalt.err (!%p3066_p4)
}
  0x3a   : > { %2902 = dma.hbm_to_vmem [thread:$0]  (!%p3510_p6), %s4692_s1, 16, %s3502_s17, [#allocation6]  }
  0x3b   : > { %s4694_s3 = sld [smem:[#allocation40_spill]] }
  0x41   : > { %s3070_s23 = scalar_lea.hbm %s4694_s3, 64 }
  0x42   : > { %p3071_p10 = scmp.ne.s32.totalorder %s4694_s3, %s3070_s23  ;;  %p3077_p4 = scmp.lt.u32.totalorder %s3070_s23, %s4694_s3 }
  0x44   : > { %p3073_p11 = pnand %p3071_p10, %p3526_p8 }
  0x46   : > { %p3074_p12 = pneg %p3073_p11 }
  0x48   : > { %p3079_p13 = pnand %p3077_p4, %p3074_p12 }
  0x4a   : > { %3082 = shalt.err (!%p3079_p13)
}
  0x4b   : > { %s3083_s17 = scalar_lea.vmem %s3506_s19, 64  ;;  %p3091_p7 = scmp.lt.s32.totalorder %s3506_s19, %s3506_s19 }
  0x4c   : > { %p3084_p0 = scmp.ne.s32.totalorder %s3506_s19, %s3083_s17  ;;  %p3092_p9 = scmp.lt.s32.totalorder %s3083_s17, %s3083_s17 }
  0x4e   : > { %p3086_p3 = pnand %p3084_p0, %p3526_p8  ;;  %p3093_p10 = por %p3092_p9, %p3091_p7 }
  0x50   : > { %p3087_p5 = pneg %p3086_p3 }
  0x52   : > { %p3094_p11 = pnand %p3093_p10, %p3087_p5 }
  0x54   : > { %3097 = shalt.err (!%p3094_p11)
}
  0x55   : > { %2908 = dma.hbm_to_vmem [thread:$0]  (!%p3510_p6), %s4694_s3, 64, %s3506_s19, [#allocation9]  }
  0x56   : > { %s4695_s5 = sld [smem:[#allocation42_spill]] }
  0x5c   : > { %s3098_s18 = scalar_lea.hbm %s4695_s5, 16 }
  0x5d   : > { %p3099_p12 = scmp.ne.s32.totalorder %s4695_s5, %s3098_s18  ;;  %p3105_p0 = scmp.lt.u32.totalorder %s3098_s18, %s4695_s5 }
  0x5f   : > { %p3101_p4 = pnand %p3099_p12, %p3526_p8 }
  0x61   : > { %p3102_p13 = pneg %p3101_p4 }
  0x63   : > { %p3107_p3 = pnand %p3105_p0, %p3102_p13 }
  0x65   : > { %3110 = shalt.err (!%p3107_p3)
}
  0x66   : > { %s3111_s19 = scalar_lea.vmem %s3514_s22, 16  ;;  %s3118_s17 = scalar_lea.vmem %s3514_s22, 32 }
  0x67   : > { %p3112_p5 = scmp.ne.s32.totalorder %s3514_s22, %s3111_s19  ;;  %p3119_p10 = scmp.lt.s32.totalorder %s3514_s22, %s3514_s22 }
  0x68   : > { %p3120_p11 = scmp.lt.s32.totalorder %s3118_s17, %s3111_s19 }
  0x69   : > { %p3114_p7 = pnand %p3112_p5, %p3526_p8 }
  0x6a   : > { %p3121_p12 = por %p3120_p11, %p3119_p10 }
  0x6b   : > { %p3115_p9 = pneg %p3114_p7 }
  0x6d   : > { %p3122_p4 = pnand %p3121_p12, %p3115_p9 }
  0x6f   : > { %3125 = shalt.err (!%p3122_p4)
}
  0x70   : > { %2914 = dma.hbm_to_vmem [thread:$0]  (!%p3510_p6), %s4695_s5, 16, %s3514_s22, [#allocation12]  }
  0x71   : > { %s4696_s2 = sld [smem:[#allocation39_spill]] }
  0x77   : > { %s3126_s18 = scalar_lea.hbm %s4696_s2, 16 }
  0x78   : > { %p3127_p13 = scmp.ne.s32.totalorder %s4696_s2, %s3126_s18  ;;  %p3133_p5 = scmp.lt.u32.totalorder %s3126_s18, %s4696_s2 }
  0x7a   : > { %p3129_p0 = pnand %p3127_p13, %p3526_p8 }
  0x7c   : > { %p3130_p3 = pneg %p3129_p0 }
  0x7e   : > { %p3135_p7 = pnand %p3133_p5, %p3130_p3 }
  0x80   : > { %3138 = shalt.err (!%p3135_p7)
}
  0x81   : > { %s3139_s19 = scalar_lea.vmem %s248_s12, 16  ;;  %s3146_s22 = scalar_lea.vmem %s248_s12, 32 }
  0x82   : > { %p3140_p9 = scmp.ne.s32.totalorder %s248_s12, %s3139_s19  ;;  %p3147_p12 = scmp.lt.s32.totalorder %s248_s12, %s248_s12 }
  0x83   : > { %p3148_p4 = scmp.lt.s32.totalorder %s3146_s22, %s3139_s19 }
  0x84   : > { %p3142_p10 = pnand %p3140_p9, %p3526_p8 }
  0x85   : > { %p3149_p2 = por %p3148_p4, %p3147_p12 }
  0x86   : > { %p3143_p11 = pneg %p3142_p10 }
  0x88   : > { %p3150_p1 = pnand %p3149_p2, %p3143_p11 }
  0x8a   : > { %3153 = shalt.err (!%p3150_p1)
}
  0x8b   : > { %2905 = dma.hbm_to_vmem [thread:$0]  (!%p3510_p6), %s4696_s2, 16, %s248_s12, [#allocation6]  }
  0x8c   : > { %s3380_s14 = smov [#allocation10]   ;;  %s3381_s16 = smov [#allocation13]  }
  0x8d   : > { %s269_s8 = sshll.u32 %s3380_s14, 4  ;;  %s290_s18 = sshll.u32 %s3381_s16, 4  ;;  %s270_s8 = int_to_ptr.vmem [resolvable:$true] %s269_s8  ;;  %s291_s18 = int_to_ptr.vmem [resolvable:$true] %s290_s18 }
  0x8e   : > { %s4697_s4 = sld [smem:[#allocation41_spill]] }
  0x94   : > { %s3154_s7 = scalar_lea.hbm %s4697_s4, 16 }
  0x95   : > { %p3155_p1 = scmp.ne.s32.totalorder %s4697_s4, %s3154_s7  ;;  %p3161_p0 = scmp.lt.u32.totalorder %s3154_s7, %s4697_s4 }
  0x97   : > { %p3157_p2 = pnand %p3155_p1, %p3526_p8 }
  0x99   : > { %p3158_p13 = pneg %p3157_p2 }
  0x9b   : > { %p3163_p3 = pnand %p3161_p0, %p3158_p13 }
  0x9d   : > { %3166 = shalt.err (!%p3163_p3)
}
  0x9e   : > { %s3167_s12 = scalar_lea.vmem %s270_s8, 16  ;;  %s3174_s0 = scalar_lea.vmem %s270_s8, 32 }
  0x9f   : > { %p3168_p5 = scmp.ne.s32.totalorder %s270_s8, %s3167_s12  ;;  %p3175_p10 = scmp.lt.s32.totalorder %s270_s8, %s270_s8 }
  0xa0   : > { %p3176_p11 = scmp.lt.s32.totalorder %s3174_s0, %s3167_s12 }
  0xa1   : > { %p3170_p7 = pnand %p3168_p5, %p3526_p8 }
  0xa2   : > { %p3177_p12 = por %p3176_p11, %p3175_p10 }
  0xa3   : > { %p3171_p9 = pneg %p3170_p7 }
  0xa5   : > { %p3178_p4 = pnand %p3177_p12, %p3171_p9 }
  0xa7   : > { %3181 = shalt.err (!%p3178_p4)
}
  0xa8   : > { %2911 = dma.hbm_to_vmem [thread:$0]  (!%p3510_p6), %s4697_s4, 16, %s270_s8, [#allocation9]  }
  0xa9   : > { %s3182_s7 = scalar_lea.hbm %s4657_s6, 2304 }
  0xaa   : > { %p3183_p1 = scmp.ne.s32.totalorder %s4657_s6, %s3182_s7  ;;  %p3189_p0 = scmp.lt.u32.totalorder %s3182_s7, %s4657_s6 }
  0xac   : > { %p3185_p2 = pnand %p3183_p1, %p3526_p8 }
  0xae   : > { %p3186_p13 = pneg %p3185_p2 }
  0xb0   : > { %p3191_p3 = pnand %p3189_p0, %p3186_p13 }
  0xb2   : > { %3194 = shalt.err (!%p3191_p3)
}
  0xb3   : > { %s3195_s12 = scalar_lea.vmem %s291_s18, 2304  ;;  %p3203_p10 = scmp.lt.s32.totalorder %s291_s18, %s291_s18 }
  0xb4   : > { %p3196_p5 = scmp.ne.s32.totalorder %s291_s18, %s3195_s12  ;;  %p3204_p11 = scmp.lt.s32.totalorder %s3195_s12, %s3195_s12 }
  0xb6   : > { %p3198_p7 = pnand %p3196_p5, %p3526_p8  ;;  %p3205_p12 = por %p3204_p11, %p3203_p10 }
  0xb8   : > { %p3199_p9 = pneg %p3198_p7 }
  0xba   : > { %p3206_p4 = pnand %p3205_p12, %p3199_p9 }
  0xbc   : > { %3209 = shalt.err (!%p3206_p4)
}
  0xbd   : > { %s4667_s8 = smov 128   ;;  %s4668_s15 = smov 8  }
  0xbe   : > { %2917 = dma.hbm_to_vmem [thread:$0]  (!%p3510_p6), %s4657_s6, 2304, %s291_s18, [#allocation12], %s4667_s8, %s4667_s8, %s4668_s15  }
  0xbf   : > { %s2455_s16 = sadd.s32 4294967294, %s3374_s11   ;;  %s35_s21 = sadd.s32 1, %s3366_s9 }
  0xc0   : > { %s38_s23 = sadd.s32 1, %s3370_s10  ;;  %p36_p8 = scmp.ge.s32.totalorder %s35_s21, 2 }
  0xc1   : > { %s45_s7 = sadd.s32 1, %s3354_s29  ;;  %p52_p1 = scmp.ne.s32.totalorder %s3354_s29, %s3350_s28 }
  0xc2   : > { %p53_p2 = scmp.eq.s32.totalorder %s3374_s11, 0  ;;  %s4776_s21 = smov (%p36_p8, %s35_s21), 0 }
  0xc3   : > { %s4698_s20 = sld [smem:[#allocation22_spill]]  ;;  %s4778_s23 = smov (!%p36_p8, %s38_s23), %s3370_s10 }
  0xc4   : > { %p3663_p13 = por %p53_p2, %p52_p1  ;;  %p58_p6 = scmp.ne.s32.totalorder %s3350_s28, %s3346_s27 }
  0xc5   : > { %p40_p0 = scmp.ge.s32.totalorder %s4778_s23, 2  ;;  %s195_s30 = ssub.s32 %s3366_s9, %s4776_s21 }
  0xc6   : > { %p4700_p3 = scmp.ne.s32.totalorder %s4686_s13, 0  ;;  %s199_s22 = sadd.s32 1, %s3342_s26 }
  0xc7   : > { %s4780_s23 = smov (%p40_p0, %s4778_s23), 0  ;;  %p209_p7 = scmp.ne.s32.totalorder %s3342_s26, %s3338_s25 }
  0xc8   : > { %p3673_p5 = por %p4700_p3, %p58_p6  ;;  %p215_p9 = scmp.ne.s32.totalorder %s3338_s25, %s3334_s24 }
  0xc9   : > { %s42_s17 = ssub.s32 %s3370_s10, %s4780_s23  ;;  %p216_p10 = scmp.eq.s32.totalorder %s2455_s16, 3 }
  0xca   : > { %p43_p11 = scmp.eq.s32.totalorder %s42_s17, 0  ;;  %s196_s27 = sor.u32 %s195_s30, %s42_s17 }
  0xcb   : > { %p197_p12 = scmp.eq.s32.totalorder %s196_s27, 0  ;;  %p4702_p4 = scmp.ne.s32.totalorder %s4698_s20, 0 }
  0xcc   : > { %s3693_s0 = scalar_select %p43_p11, %s3354_s29, %s45_s7  }
  0xcd   : > { %p3688_p8 = por %p4702_p4, %p209_p7  ;;  %p3698_p1 = por %p216_p10, %p215_p9 }
  0xce   : > { %s3696_s14 = scalar_select %p197_p12, %s3342_s26, %s199_s22  }
  0xcf   : > { %s4703_s12 = scalar_select %p3688_p8, 1, 0 }
  0xd0   : > { %s4704_s8 = scalar_select %p3698_p1, 1, 0 }
  0xd1   : > { %p2932_p2 = scmp.lt.s32.totalorder %s3374_s11, 4  ;;  %s304_s15 = sand.u32 1, %s3354_s29  }
  0xd2   : > { %s2869_s1 = smul.u32 4608, %s3370_s10  ;;  %s4706_s27 = sld [smem:[#allocation37_spill]] }
  0xd3   : > { %s2868_s16 = smul.u32 288, %s304_s15  ;;  %p3707_p6 = pnand %p2932_p2, %p3663_p13 }
  0xd4   : > { %s3718_s18 = scalar_lea.sflag [#allocation3], %s304_s15 }
  0xd5   : > { %s308_s22 = scalar_lea.vmem [#allocation2], %s2868_s16  ;;  %p3212_p0 = pneg %p3707_p6 }
  0xd6   : > { %s315_s3 = sshll.u32 %s308_s22, 4  ;;  %s3716_s3 = int_to_ptr.vmem [resolvable:$true] %s315_s3 }
  0xd8   : > { %s4707_s2 = smov %s4706_s27  ;;  %s3714_s7 = scalar_lea.hbm %s4706_s27, %s2869_s1 }
  0xd9   : > { %s3210_s4 = scalar_lea.hbm %s3714_s7, 4608  ;;  %s3215_s17 = scalar_lea.hbm %s4707_s2, 9216 }
  0xda   : > { %p3211_p13 = scmp.ne.s32.totalorder %s3714_s7, %s3210_s4  ;;  %p3216_p9 = scmp.lt.u32.totalorder %s3714_s7, %s4707_s2 }
  0xdb   : > { %p3217_p10 = scmp.lt.u32.totalorder %s3215_s17, %s3210_s4  ;;  %p3219_p12 = scmp.lt.u32.totalorder %s3210_s4, %s3714_s7 }
  0xdc   : > { %p3213_p3 = pnand %p3212_p0, %p3211_p13 }
  0xdd   : > { %p3218_p11 = por %p3217_p10, %p3216_p9 }
  0xde   : > { %p3214_p7 = pneg %p3213_p3 }
  0xdf   : > { %p3220_p4 = por %p3219_p12, %p3218_p11 }
  0xe1   : > { %p3221_p2 = pnand %p3220_p4, %p3214_p7 }
  0xe3   : > { %3224 = shalt.err (!%p3221_p2)
}
  0xe4   : > { %s3225_s15 = scalar_lea.vmem %s3716_s3, 4608  ;;  %s3384_s16 = smov [#allocation2]  }
  0xe5   : > { %p3226_p13 = scmp.ne.s32.totalorder %s3716_s3, %s3225_s15  ;;  %s3230_s22 = sshll.u32 %s3384_s16, 4  ;;  %s3231_s22 = int_to_ptr.vmem [resolvable:$false] %s3230_s22 }
  0xe6   : > { %s3232_s5 = scalar_lea.vmem %s3231_s22, 9216  ;;  %p3233_p8 = scmp.lt.s32.totalorder %s3716_s3, %s3231_s22 }
  0xe7   : > { %p3228_p3 = pnand %p3226_p13, %p3212_p0  ;;  %p3234_p9 = scmp.lt.s32.totalorder %s3232_s5, %s3225_s15 }
  0xe9   : > { %p3229_p1 = pneg %p3228_p3  ;;  %p3235_p10 = por %p3234_p9, %p3233_p8 }
  0xeb   : > { %p3236_p11 = pnand %p3235_p10, %p3229_p1 }
  0xed   : > { %3239 = shalt.err (!%p3236_p11)
}
  0xee   : > { %s4708_s4 = smov 8   ;;  %s4709_s1 = smov 128  }
  0xef   : > { %2921 = dma.hbm_to_vmem [thread:$0]  (!%p3707_p6), %s3714_s7, 4608, %s3716_s3, %s3718_s18, %s4709_s1, %s4709_s1, %s4708_s4  }
  0xf0   : > { %s4710_s20 = sld [smem:[#allocation23_spill]] }
  0xf6   : > { %p4711_p0 = scmp.ne.s32.totalorder %s4710_s20, 0 }
  0xf8   : > { %327 = sbr.rel (%p4711_p0) target bundleno = 944 (0x3b0), region = 48 }
  0xff   : > { %s329_s17 = sand.u32 1, %s3350_s28  }
 0x100   : > { %s2870_s27 = smul.u32 288, %s329_s17  ;;  %s330_s15 = scalar_lea.sflag [#allocation3], %s329_s17 }
 0x102   : > { %s333_s16 = scalar_lea.vmem [#allocation2], %s2870_s27 }
 0x103   : > { %3313 = dma.done.wait (%p3673_p5), %s330_s15, 4608  }
 0x104   : > { %3315 = vsyncadd (%p3673_p5), %s330_s15, 4294962688  ;;  %p4712_p8 = scmp.ne.s32.totalorder %s4686_s13, 0 }
 0x106   : > { %3317 = dma.done.wait (%p4712_p8), [#allocation6], 32  }
 0x107   : > { %3319 = vsyncadd (%p4712_p8), [#allocation6], 4294967264 }
 0x108   : > { %3321 = dma.done.wait (%p4712_p8), [#allocation9], 80  }
 0x109   : > { %3323 = vsyncadd (%p4712_p8), [#allocation9], 4294967216 }
 0x10a   : > { %3325 = dma.done.wait (%p4712_p8), [#allocation12], 2320  }
 0x10b   : > { %3327 = vsyncadd (%p4712_p8), [#allocation12], 4294964976  ;;  %s4713_s3 = sld [smem:[#allocation20_spill]]  ;;  %vm547_vm0 = vcmask 1043456   ;;  %v485_v0 = vld [vmem:[#allocation8] sm:$0xf] }
 0x10c   : > { %v3772_v2 = vld [vmem:[#allocation5] ss:$0 sm:$0xff]  ;;  %2660 = vmatprep.subr.msk.mxu0 %vm547_vm0, %v485_v0  ;;  %v3775_v4 = vld [vmem:[#allocation7] ss:$0 sm:$0xff]  ;;  %vm486_vm1 = vcmask 31744   ;;  %s3386_s7 = smov 16  }
 0x10d   : > { %2661 = vmatpush3.msk.msra.mxu0 %vm547_vm0, %v485_v0  ;;  %s3387_s18 = smov 32   ;;  %s3388_s5 = smov 4  }
 0x10e   : > { %s385_s4 = sand.u32 1, %s3338_s25   ;;  %s4761_s17 = sld [smem:[#allocation21_spill]] }
 0x10f   : > { %s2472_s1 = sshll.u32 %s385_s4, 7  ;;  %p4763_p7 = scmp.ne.s32.totalorder %s4703_s12, 0 }
 0x110   : > { %s4526_s20 = scalar_lea.vmem [#allocation14], %s2472_s1  ;;  %s3389_s1 = smov [#allocation14]  }
 0x111   : > { %s2473_s19 = sshll.u32 %s4713_s3, 7  ;;  %p831_p5 = scmp.eq.s32.totalorder %s4713_s3, 0 }
 0x112   : > { %s3769_s30 = scalar_lea.vmem %s333_s16, %s2473_s19 [#allocation2]  ;;  %p875_p1 = scmp.eq.s32.totalorder %s4713_s3, 1 }
 0x113   : > { %v391_v1 = vld [vmem:[%s3769_s30] sm:$0xff]  ;;  %v392_v5 = vld [vmem:[%s3769_s30 + $0x8] sm:$0xff]  ;;  %v3779_v6 = vld [vmem:[%s3769_s30 + $0x10] sm:$0xff]  ;;  %s832_s13 = scalar_select %p831_p5, 1, 0 }
 0x114   : > { %v418_v3 = vmul.f32 %v3772_v2, %v391_v1  ;;  %v419_v7 = vmul.f32 %v3772_v2, %v392_v5  ;;  %v420_v8 = vmul.f32 %v3772_v2, %v3779_v6  ;;  %v3785_v9 = vld [vmem:[%s3769_s30 + $0x18] sm:$0xff]  ;;  %v3788_v10 = vld [vmem:[%s3769_s30 + $0x20] sm:$0xff]  ;;  %v3791_v11 = vld [vmem:[%s3769_s30 + $0x28] sm:$0xff]  ;;  %s4116_s22 = scalar_select %p875_p1, 1, 0 }
 0x115   : > { %v421_v13 = vmul.f32 %v3772_v2, %v3785_v9  ;;  %v422_v14 = vmul.f32 %v3772_v2, %v3788_v10  ;;  %v3799_v15 = vld [vmem:[%s3769_s30 + $0x30] sm:$0xff]  ;;  %v423_v18 = vmul.f32 %v3772_v2, %v3791_v11  ;;  %v3810_v23 = vld [vmem:[%s3769_s30 + $0x38] sm:$0xff]  ;;  %v3813_v26 = vld [vmem:[%s3769_s30 + $0x40] sm:$0xff]  ;;  %s2568_s27 = sshll.u32 %s4713_s3, 4  ;;  %s2569_s15 = sshll.u32 %s4761_s17, 5 }
 0x116   : > { %v445_v12 = vadd.f32 %v3775_v4, %v418_v3  ;;  %v446_v16 = vadd.f32 %v3775_v4, %v419_v7  ;;  %v447_v17 = vadd.f32 %v3775_v4, %v420_v8  ;;  %v424_v22 = vmul.f32 %v3772_v2, %v3799_v15  ;;  %v3825_v33 = vld [vmem:[%s3769_s30 + $0x48] sm:$0xff]  ;;  %v3828_v34 = vld [vmem:[%s3769_s30 + $0x50] sm:$0xff]  ;;  %v3839_v41 = vld [vmem:[%s3769_s30 + $0x58] sm:$0xff]  ;;  %s2305_s16 = sadd.s32 %s2569_s15, %s2568_s27  ;;  %s2308_s19 = sshll.u32 %s4526_s20, 4  ;;  %s4580_s19 = int_to_ptr.vmem [resolvable:$true] %s2308_s19 }
 0x117   : > { %v448_v20 = vadd.f32 %v3775_v4, %v421_v13  ;;  %v449_v21 = vadd.f32 %v3775_v4, %v422_v14  ;;  %v450_v28 = vadd.f32 %v3775_v4, %v423_v18  ;;  %v425_v29 = vmul.f32 %v3772_v2, %v3810_v23  ;;  %v3842_v42 = vld [vmem:[%s3769_s30 + $0x60] sm:$0xff]  ;;  %v3853_v49 = vld [vmem:[%s3769_s30 + $0x68] sm:$0xff]  ;;  %v3856_v50 = vld [vmem:[%s3769_s30 + $0x70] sm:$0xff]  ;;  %s2570_s3 = sshll.u32 %s2305_s16, 7  ;;  %s3244_s17 = sshll.u32 %s3389_s1, 4  ;;  %s3245_s17 = int_to_ptr.vmem [resolvable:$false] %s3244_s17 }
 0x118   : > { %v465_v19 = vmax.f32 %v445_v12, 0.0  ;;  %v466_v24 = vmax.f32 %v446_v16, 0.0  ;;  %v467_v25 = vmax.f32 %v447_v17, 0.0  ;;  %v451_v31 = vadd.f32 %v3775_v4, %v424_v22  ;;  %v3867_v57 = vld [vmem:[%s3769_s30 + $0x78] sm:$0xff]  ;;  %v3870_v58 = vld [vmem:[%s3769_s30 + $0x80] sm:$0xff]  ;;  %v3881_v1 = vld [vmem:[%s3769_s30 + $0x88] sm:$0xff]  ;;  %p3247_p2 = scmp.lt.s32.totalorder %s4580_s19, %s3245_s17 }
 0x119   : > { %v468_v27 = vmax.f32 %v448_v20, 0.0  ;;  %v469_v30 = vmax.f32 %v449_v21, 0.0  ;;  %v426_v32 = vmul.f32 %v3772_v2, %v3813_v26  ;;  %v470_v35 = vmax.f32 %v450_v28, 0.0  ;;  %4714 = vst [vmem:[#allocation24_spill] sm:$0xff] %v3870_v58  ;;  %v409_v3 = vld [vmem:[%s3769_s30 + $0x90] sm:$0xff]  ;;  %v410_v16 = vld [vmem:[%s3769_s30 + $0x98] sm:$0xff] }
 0x11a   : > { %2662 = vmatprep.mubr.msk.f32.mxu0 %vm486_vm1, %v465_v19  ;;  %v452_v36 = vadd.f32 %v3775_v4, %v425_v29  ;;  %v427_v37 = vmul.f32 %v3772_v2, %v3825_v33  ;;  %v471_v38 = vmax.f32 %v451_v31, 0.0  ;;  %v428_v40 = vmul.f32 %v3772_v2, %v3828_v34  ;;  %s3246_s27 = scalar_lea.vmem %s3245_s17, 4096 }
 0x11b   : > { %2663 = vmatmul.mubr.msk.f32.vlgmr.msra.gmra.mrb[0].mxu0 %vm486_vm1, %v466_v24  ;;  %v453_v39 = vadd.f32 %v3775_v4, %v426_v32  ;;  %v429_v45 = vmul.f32 %v3772_v2, %v3839_v41  ;;  %v430_v48 = vmul.f32 %v3772_v2, %v3842_v42  ;;  %v431_v53 = vmul.f32 %v3772_v2, %v3853_v49 }
 0x11c   : > { %2665 = vmatprep.mubr.msk.f32.mxu0 %vm486_vm1, %v467_v25  ;;  %v472_v43 = vmax.f32 %v452_v36, 0.0  ;;  %v454_v44 = vadd.f32 %v3775_v4, %v427_v37  ;;  %v455_v47 = vadd.f32 %v3775_v4, %v428_v40  ;;  %v432_v56 = vmul.f32 %v3772_v2, %v3856_v50 }
 0x11d   : > { %v473_v46 = vmax.f32 %v453_v39, 0.0  ;;  %v456_v52 = vadd.f32 %v3775_v4, %v429_v45  ;;  %v457_v55 = vadd.f32 %v3775_v4, %v430_v48  ;;  %v458_v60 = vadd.f32 %v3775_v4, %v431_v53 }
 0x11e   : > { %v474_v51 = vmax.f32 %v454_v44, 0.0  ;;  %v475_v54 = vmax.f32 %v455_v47, 0.0  ;;  %v433_v61 = vmul.f32 %v3772_v2, %v3867_v57  ;;  %v459_v63 = vadd.f32 %v3775_v4, %v432_v56 }
 0x11f   : > { %2666 = vmatmul.mubr.msk.f32.gmra.mrb[2].mxu0 %vm486_vm1, %v468_v27  ;;  %v476_v59 = vmax.f32 %v456_v52, 0.0  ;;  %v477_v62 = vmax.f32 %v457_v55, 0.0  ;;  %v434_v0 = vmul.f32 %v3772_v2, %v3870_v58  ;;  %v478_v5 = vmax.f32 %v458_v60, 0.0 }
 0x120   : > { %2668 = vmatprep.mubr.msk.f32.mxu0 %vm486_vm1, %v469_v30  ;;  %v460_v7 = vadd.f32 %v3775_v4, %v433_v61  ;;  %v435_v8 = vmul.f32 %v3772_v2, %v3881_v1  ;;  %v479_v12 = vmax.f32 %v459_v63, 0.0  ;;  %v436_v14 = vmul.f32 %v3772_v2, %v409_v3 }
 0x121   : > { %v461_v13 = vadd.f32 %v3775_v4, %v434_v0  ;;  %v437_v19 = vmul.f32 %v3772_v2, %v410_v16  ;;  %v790_v2 = vlaneseq  ;;  %v4670_v31 = vmov 0.0   ;;  %v3953_v16 = vld [vmem:[#allocation10] ss:$0 sm:$0xff] }
 0x122   : > { %v480_v17 = vmax.f32 %v460_v7, 0.0  ;;  %v462_v18 = vadd.f32 %v3775_v4, %v435_v8  ;;  %v463_v21 = vadd.f32 %v3775_v4, %v436_v14 }
 0x123   : > { %2669 = vmatmul.mubr.msk.f32.gmra.mrb[4].mxu0 %vm486_vm1, %v470_v35  ;;  %v481_v20 = vmax.f32 %v461_v13, 0.0  ;;  %v464_v24 = vadd.f32 %v3775_v4, %v437_v19  ;;  %v3903_v28 = vshrl.u32 %v790_v2, 7 }
 0x124   : > { %2671 = vmatprep.mubr.msk.f32.mxu0 %vm486_vm1, %v471_v38  ;;  %v482_v22 = vmax.f32 %v462_v18, 0.0  ;;  %v483_v25 = vmax.f32 %v463_v21, 0.0  ;;  %v1664_v18 = vld [vmem:[#allocation13 + $0x8] sm:$0xff] }
 0x125   : > { %v484_v27 = vmax.f32 %v464_v24, 0.0  ;;  %v793_v29 = vadd.s32 16, %v3903_v28  ;;  %v795_v32 = vadd.s32 32, %v3903_v28  ;;  %v797_v36 = vadd.s32 48, %v3903_v28 }
 0x126   : > { %v799_v40 = vadd.s32 64, %v3903_v28  ;;  %v801_v45 = vadd.s32 80, %v3903_v28  ;;  %v810_v47 = vadd.s32 152, %v3903_v28  ;;  %v983_v52 = vand.u32 15, %v3903_v28 }
 0x127   : > { %2672 = vmatmul.mubr.msk.f32.gmra.mrb[6].mxu0 %vm486_vm1, %v472_v43  ;;  %v997_v30 = vand.u32 15, %v793_v29  ;;  %v1011_v35 = vand.u32 15, %v795_v32  ;;  %v1025_v38 = vand.u32 15, %v797_v36  ;;  %v803_v53 = vadd.s32 96, %v3903_v28 }
 0x128   : > { %2674 = vmatprep.mubr.msk.f32.mxu0 %vm486_vm1, %v473_v46  ;;  %v1039_v43 = vand.u32 15, %v799_v40  ;;  %v1053_v46 = vand.u32 15, %v801_v45  ;;  %vm1219_vm8 = vcmp.ne.s32.totalorder %v983_v52, 0  ;;  %v805_v60 = vadd.s32 112, %v3903_v28  ;;  %v1666_v45 = vld [vmem:[#allocation13 + $0x18] sm:$0xff] }
 0x129   : > { %vm1221_vm2 = vcmp.ne.s32.totalorder %v997_v30, 0  ;;  %vm1223_vm3 = vcmp.ne.s32.totalorder %v1011_v35, 0  ;;  %vm1225_vm4 = vcmp.ne.s32.totalorder %v1025_v38, 0  ;;  %v1067_v55 = vand.u32 15, %v803_v53 }
 0x12a   : > { %v3907_v4 = vsel %vm1221_vm2, 1.0, %v4670_v31  ;;  %v3912_v37 = vsel %vm1223_vm3, 1.0, %v4670_v31  ;;  %v3915_v39 = vsel %vm1225_vm4, 1.0, %v4670_v31  ;;  %vm1227_vm5 = vcmp.ne.s32.totalorder %v1039_v43, 0  ;;  %v1665_v43 = vld [vmem:[#allocation13 + $0x10] sm:$0xff] }
 0x12b   : > { %2675 = vmatmul.mubr.msk.f32.gmra.mrb[8].mxu0 %vm486_vm1, %v474_v51  ;;  %v3919_v44 = vsel %vm1227_vm5, 1.0, %v4670_v31  ;;  %vm1229_vm6 = vcmp.ne.s32.totalorder %v1053_v46, 0  ;;  %v1116_v51 = vand.u32 15, %v810_v47  ;;  %v3932_v56 = vsel %vm1219_vm8, 1.0, %v4670_v31 }
 0x12c   : > { %2677 = vmatprep.mubr.msk.f32.mxu0 %vm486_vm1, %v475_v54  ;;  %v3924_v48 = vsel %vm1229_vm6, 1.0, %v4670_v31  ;;  %vm1231_vm9 = vcmp.ne.s32.totalorder %v1067_v55, 0  ;;  %v1081_v61 = vand.u32 15, %v805_v60  ;;  %v807_v63 = vadd.s32 128, %v3903_v28 }
 0x12d   : > { %vm1298_vm7 = vcmp.ne.s32.totalorder %v1116_v51, 15  ;;  %v794_v13 = vadd.s32 24, %v3903_v28  ;;  %v796_v14 = vadd.s32 40, %v3903_v28  ;;  %v798_v21 = vadd.s32 56, %v3903_v28 }
 0x12e   : > { %v3929_v54 = vsel %vm1298_vm7, 1.0, %v4670_v31  ;;  %vm1233_vm10 = vcmp.ne.s32.totalorder %v1081_v61, 0  ;;  %v1095_v0 = vand.u32 15, %v807_v63  ;;  %v833_v30 = vstv %s832_s13 }
 0x12f   : > { %2678 = vmatmul.mubr.msk.f32.gmra.mrb[10].mxu0 %vm486_vm1, %v476_v59  ;;  %v3935_v59 = vsel %vm1231_vm9, 1.0, %v4670_v31  ;;  %v1032_v40 = vand.u32 15, %v798_v21  ;;  %vm3970_vm15 = vcmp.eq.s32.totalorder %v833_v30, 1  ;;  %v2816_v52 = vpack.c.bf16 %v1666_v45, %v1665_v43 }
 0x130   : > { %2680 = vmatprep.mubr.msk.f32.mxu0 %vm486_vm1, %v477_v62  ;;  %v3939_v62 = vsel %vm1233_vm10, 1.0, %v4670_v31  ;;  %vm1235_vm11 = vcmp.ne.s32.totalorder %v1095_v0, 0  ;;  %vm1420_vm2 = vcmp.lt.s32.totalorder %v3903_v28, 7  ;;  %vm1359_vm3 = vcmp.lt.s32.totalorder %v3903_v28, 1 }
 0x131   : > { %v3943_v3 = vsel %vm1235_vm11, 1.0, %v4670_v31  ;;  %vm3996_vm4 = vcmp.ne.s32.totalorder %v1032_v40, 15  ;;  %vm1642_vm11 = vcmask 261120  }
 0x133   : > { %2681 = vmatmul.mubr.msk.f32.gmra.mrb[12].mxu0 %vm486_vm1, %v478_v5  ;;  %v809_v5 = vadd.s32 144, %v3903_v28 }
 0x134   : > { %2683 = vmatprep.mubr.msk.f32.mxu0 %vm486_vm1, %v479_v12  ;;  %v792_v12 = vadd.s32 8, %v3903_v28 }
 0x135   : > { %v1109_v7 = vand.u32 15, %v809_v5 }
 0x136   : > { %v990_v19 = vand.u32 15, %v792_v12 }
 0x137   : > { %2684 = vmatmul.mubr.msk.f32.gmra.mrb[14].mxu0 %vm486_vm1, %v480_v17  ;;  %vm1237_vm12 = vcmp.ne.s32.totalorder %v1109_v7, 0  ;;  %v1663_v17 = vld [vmem:[#allocation13] sm:$0xff] }
 0x138   : > { %2686 = vmatprep.mubr.msk.f32.mxu0 %vm486_vm1, %v481_v20  ;;  %v3947_v8 = vsel %vm1237_vm12, 1.0, %v4670_v31  ;;  %v1004_v20 = vand.u32 15, %v794_v13  ;;  %vm3961_vm13 = vcmp.ne.s32.totalorder %v990_v19, 15  ;;  %v1667_v19 = vld [vmem:[#allocation13 + $0x20] sm:$0xff]  ;;  %vm1621_vm12 = vcmask 130048  }
 0x139   : > { %v3981_v0 = vsel %vm3961_vm13, 1.0, %v4670_v31  ;;  %vm1676_vm13 = vcmask 392192  }
 0x13a   : > { %vm3965_vm14 = vcmp.ne.s32.totalorder %v1004_v20, 15 }
 0x13b   : > { %2687 = vmatmul.mubr.msk.f32.gmra.mrb[16].mxu0 %vm486_vm1, %v482_v22  ;;  %v2812_v22 = vpack.c.bf16 %v1664_v18, %v1663_v17  ;;  %v3986_v5 = vsel %vm3965_vm14, 1.0, %v4670_v31  ;;  %v1670_v17 = vld [vmem:[#allocation13 + $0x30] sm:$0xff]  ;;  %v1671_v18 = vld [vmem:[#allocation13 + $0x38] sm:$0xff]  ;;  %vm2275_vm14 = vcmask 64512  }
 0x13c   : > { %2689 = vmatprep.mubr.msk.f32.mxu0 %vm486_vm1, %v483_v25  ;;  %v3956_v25 = vld [vmem:[#allocation11] ss:$0 sm:$0xff]  ;;  %v2800_v43 = vpack.c.bf16 %v1671_v18, %v1670_v17 }
 0x13d   : > { %2813 = vmatprep.subr.bf16.mxu1 %v2812_v22 }
 0x13e   : > { %2815 = vmatpush3.bf16.msra.mxu1 %v2812_v22  ;;  %2801 = vmatprep.subr.bf16.mxu0 %v2800_v43 }
 0x13f   : > { %2690 = vmatmul.mubr.msk.f32.gmra.mrb[18].mxu0 %vm486_vm1, %v484_v27  ;;  %v1018_v27 = vand.u32 15, %v796_v14  ;;  %2817 = vmatprep.subr.bf16.mxu1 %v2816_v52 }
 0x140   : > { %2803 = vmatpush3.bf16.msra.mxu0 %v2800_v43  ;;  %v4051_v43 = vadd.s32 72, %v3903_v28 }
 0x141   : > { %vm1284_vm0 = vcmp.ne.s32.totalorder %v1018_v27, 15 }
 0x142   : > { %v3994_v13 = vsel %vm1284_vm0, 1.0, %v4670_v31  ;;  %2819 = vmatpush3.bf16.msra.mxu1 %v2816_v52 }
 0x1ee   : > { %v2664_v24 = vpop.f32.mrb[0].mxu0 }
 0x1ef   : > { %v724_v2 = vmul.f32 %v2664_v24, %v3953_v16  ;;  %v617_v29 = vpop.f32.mrb[1].mxu0 }
 0x1f0   : > { %v723_v32 = vmul.f32 %v3953_v16, %v617_v29 }
 0x1f1   : > { %v751_v35 = vadd.f32 %v3956_v25, %v724_v2  ;;  %v1668_v2 = vld [vmem:[#allocation13 + $0x28] sm:$0xff] }
 0x1f2   : > { %v750_v46 = vadd.f32 %v3956_v25, %v723_v32  ;;  %v2667_v47 = vpop.f32.mrb[2].mxu0  ;;  %v2820_v45 = vpack.c.bf16 %v1668_v2, %v1667_v19 }
 0x1f3   : > { %v771_v53 = vmax.f32 %v751_v35, 0.0  ;;  %v726_v55 = vmul.f32 %v2667_v47, %v3953_v16  ;;  %v627_v60 = vpop.f32.mrb[3].mxu0 }
 0x1f4   : > { %v770_v61 = vmax.f32 %v750_v46, 0.0  ;;  %v725_v63 = vmul.f32 %v3953_v16, %v627_v60  ;;  %2821 = vmatprep.subr.bf16.mxu1 %v2820_v45 }
 0x1f5   : > { %v753_v7 = vadd.f32 %v3956_v25, %v726_v55  ;;  %v3991_v12 = vsel %vm3970_vm15, 0.0, %v771_v53  ;;  %v1672_v53 = vld [vmem:[#allocation13 + $0x40] sm:$0xff]  ;;  %v1673_v55 = vld [vmem:[#allocation13 + $0x48] sm:$0xff]  ;;  %2823 = vmatpush3.bf16.msra.mxu1 %v2820_v45 }
 0x1f6   : > { %v752_v20 = vadd.f32 %v3956_v25, %v725_v63  ;;  %1483 = vrot.lane.b32.xlu0 %v3991_v12, %s3386_s7  ;;  %v1340_v21 = vrot.slane %v3991_v12, 7  ;;  %v1401_v22 = vrot.slane %v3991_v12, 1  ;;  %v2670_v24 = vpop.f32.mrb[4].mxu0  ;;  %v4007_v27 = vsel %vm3970_vm15, 0.0, %v770_v61 }
 0x1f7   : > { %v4009_v29 = vmax.f32 %v753_v7, 0.0  ;;  %v728_v30 = vmul.f32 %v2670_v24, %v3953_v16  ;;  %v637_v32 = vpop.f32.mrb[5].mxu0  ;;  %v4672_v35 = vrot.slane %v4007_v27, 7  ;;  %v4673_v36 = vrot.slane %v4007_v27, 1 }
 0x1f8   : > { %v772_v38 = vmax.f32 %v752_v20, 0.0  ;;  %v727_v40 = vmul.f32 %v3953_v16, %v637_v32  ;;  %v4039_v20 = vsel %vm3996_vm4, 1.0, %v4670_v31  ;;  %v2804_v24 = vpack.c.bf16 %v1673_v55, %v1672_v53  ;;  %v1674_v53 = vld [vmem:[#allocation13 + $0x50] sm:$0xff]  ;;  %v1675_v55 = vld [vmem:[#allocation13 + $0x58] sm:$0xff] }
 0x1f9   : > { %v4674_v46 = vrot.slane %v4009_v29, 7  ;;  %v755_v47 = vadd.f32 %v3956_v25, %v728_v30  ;;  %1487 = vrot.lane.b32.xlu1 %v4009_v29, %s3386_s7  ;;  %v1439_v51 = vsel %vm1420_vm2, %v4673_v36, %v1401_v22  ;;  %v1403_v52 = vrot.slane %v4009_v29, 1 }
 0x1fa   : > { %v1341_v60 = vrot.slane %v772_v38, 7  ;;  %v754_v61 = vadd.f32 %v3956_v25, %v727_v40  ;;  %1481 = vrot.lane.b32.xlu0 %v4007_v27, %s3386_s7  ;;  %v2673_v63 = vpop.f32.mrb[6].mxu0  ;;  %v1402_v7 = vrot.slane %v772_v38, 1  ;;  %v4031_v12 = vsel %vm1359_vm3, %v4672_v35, %v1340_v21  ;;  %2805 = vmatprep.subr.bf16.mxu0 %v2804_v24 }
 0x1fb   : > { %4723 = vst [vmem:[#allocation25_spill] sm:$0xff] %v4031_v12  ;;  %v4033_v17 = vmax.f32 %v755_v47, 0.0  ;;  %v730_v18 = vmul.f32 %v2673_v63, %v3953_v16  ;;  %v647_v19 = vpop.f32.mrb[7].mxu0  ;;  %2807 = vmatpush3.bf16.msra.mxu0 %v2804_v24 }
 0x1fc   : > { %v774_v2 = vmax.f32 %v754_v61, 0.0  ;;  %v729_v30 = vmul.f32 %v3953_v16, %v647_v19  ;;  %v1437_v32 = vsel %vm1420_vm2, %v1402_v7, %v1403_v52  ;;  %v1438_v40 = vsel %vm1420_vm2, %v1401_v22, %v1402_v7 }
 0x1fd   : > { %v757_v63 = vadd.f32 %v3956_v25, %v730_v18  ;;  %1561 = vrot.lane.b32.xlu1 %v1439_v51, %s3387_s18  ;;  %v1405_v14 = vrot.slane %v4033_v17, 1  ;;  %v4059_v51 = vsel %vm1359_vm3, %v1341_v60, %v4674_v46  ;;  %v1377_v35 = vsel %vm1359_vm3, %v1340_v21, %v1341_v60 }
 0x1fe   : > { %v1343_v61 = vrot.slane %v774_v2, 7  ;;  %v756_v19 = vadd.f32 %v3956_v25, %v729_v30  ;;  %1485 = vrot.lane.b32.xlu0 %v772_v38, %s3386_s7  ;;  %v2676_v22 = vpop.f32.mrb[8].mxu0  ;;  %v1404_v45 = vrot.slane %v774_v2, 1  ;;  %4724 = vst [vmem:[#allocation26_spill] sm:$0xff] %v4059_v51  ;;  %v2808_v30 = vpack.c.bf16 %v1675_v55, %v1674_v53 }
 0x1ff   : > { %v4061_v7 = vmax.f32 %v757_v63, 0.0  ;;  %v732_v18 = vmul.f32 %v2676_v22, %v3953_v16  ;;  %v657_v31 = vpop.f32.mrb[9].mxu0  ;;  %v1442_v21 = vmul.f32 %v3981_v0, %v1438_v40  ;;  %v4085_v55 = vmul.f32 %v3907_v4, %v1377_v35 }
 0x200   : > { %v4066_v38 = vmax.f32 %v756_v19, 0.0  ;;  %v731_v36 = vmul.f32 %v3953_v16, %v657_v31  ;;  %v1435_v47 = vsel %vm1420_vm2, %v1404_v45, %v1405_v14  ;;  %v1436_v46 = vsel %vm1420_vm2, %v1403_v52, %v1404_v45  ;;  %2809 = vmatprep.subr.bf16.mxu0 %v2808_v30 }
 0x201   : > { %v1346_v63 = vrot.slane %v4061_v7, 7  ;;  %1491 = vrot.lane.b32.xlu1 %v4033_v17, %s3386_s7  ;;  %v759_v22 = vadd.f32 %v3956_v25, %v732_v18  ;;  %v1407_v60 = vrot.slane %v4061_v7, 1  ;;  %4725 = vst [vmem:[#allocation27_spill] sm:$0xff] %v4085_v55  ;;  %v4726_v45 = vrot.slane %v4033_v17, 7  ;;  %2811 = vmatpush3.bf16.msra.mxu0 %v2808_v30 }
 0x202   : > { %v1345_v31 = vrot.slane %v4066_v38, 7  ;;  %1565 = vrot.lane.b32.xlu0 %v1437_v32, %s3387_s18  ;;  %v758_v24 = vadd.f32 %v3956_v25, %v731_v36  ;;  %v2679_v52 = vpop.f32.mrb[10].mxu0  ;;  %v1406_v53 = vrot.slane %v4066_v38, 1  ;;  %v4728_v36 = vrot.slane %v4009_v29, 7 }
 0x203   : > { %v4087_v19 = vmax.f32 %v759_v22, 0.0  ;;  %v734_v0 = vmul.f32 %v2679_v52, %v3953_v16  ;;  %v667_v40 = vpop.f32.mrb[11].mxu0  ;;  %v4094_v18 = vsel %vm1359_vm3, %v1343_v61, %v4726_v45 }
 0x204   : > { %4727 = vst [vmem:[#allocation28_spill] sm:$0xff] %v4094_v18  ;;  %v1375_v32 = vsel %vm1359_vm3, %v4728_v36, %v1343_v61  ;;  %v4100_v4 = vmax.f32 %v758_v24, 0.0  ;;  %v733_v35 = vmul.f32 %v3953_v16, %v667_v40  ;;  %v4105_v22 = vsel %vm1420_vm2, %v1406_v53, %v1407_v60 }
 0x205   : > { %v1434_v52 = vsel %vm1420_vm2, %v1405_v14, %v1406_v53  ;;  %1563 = vrot.lane.b32.xlu1 %v1442_v21, %s3387_s18  ;;  %v761_v29 = vadd.f32 %v3956_v25, %v734_v0  ;;  %v1409_v61 = vrot.slane %v4087_v19, 1  ;;  %v4123_v21 = vmul.f32 %v3912_v37, %v1375_v32 }
 0x206   : > { %v1347_v24 = vrot.slane %v4100_v4, 7  ;;  %1489 = vrot.lane.b32.xlu0 %v774_v2, %s3386_s7  ;;  %v760_v40 = vadd.f32 %v3956_v25, %v733_v35  ;;  %v2682_v14 = vpop.f32.mrb[12].mxu0  ;;  %v1408_v53 = vrot.slane %v4100_v4, 1  ;;  %v4130_v45 = vsel %vm1359_vm3, %v1345_v31, %v1346_v63 }
 0x207   : > { %4729 = vst [vmem:[#allocation29_spill] sm:$0xff] %v4123_v21  ;;  %v4125_v0 = vmax.f32 %v761_v29, 0.0  ;;  %v736_v36 = vmul.f32 %v2682_v14, %v3953_v16  ;;  %v677_v30 = vpop.f32.mrb[13].mxu0  ;;  %4730 = vst [vmem:[#allocation30_spill] sm:$0xff] %v4130_v45  ;;  %v4731_v2 = vrot.slane %v4033_v17, 7  ;;  %v1444_v29 = vmul.f32 %v3986_v5, %v1436_v46 }
 0x208   : > { %v4136_v18 = vmax.f32 %v760_v40, 0.0  ;;  %v735_v51 = vmul.f32 %v3953_v16, %v677_v30  ;;  %v4141_v37 = vsel %vm1420_vm2, %v1408_v53, %v1409_v61  ;;  %v4145_v32 = vsel %vm1420_vm2, %v1407_v60, %v1408_v53 }
 0x209   : > { %v1373_v35 = vsel %vm1359_vm3, %v4731_v2, %v1345_v31  ;;  %1495 = vrot.lane.b32.xlu1 %v4061_v7, %s3386_s7  ;;  %v763_v17 = vadd.f32 %v3956_v25, %v736_v36  ;;  %v1411_v31 = vrot.slane %v4125_v0, 1  ;;  %v877_v40 = vstv %s4116_s22  ;;  %s4590_s22 = scalar_lea.sflag [#allocation4], %s385_s4 }
 0x20a   : > { %1569 = vrot.lane.b32.xlu0 %v1435_v47, %s3387_s18  ;;  %v762_v14 = vadd.f32 %v3956_v25, %v735_v51  ;;  %v2685_v2 = vpop.f32.mrb[14].mxu0  ;;  %v1410_v60 = vrot.slane %v4136_v18, 1  ;;  %v4158_v53 = vmul.f32 %v3915_v39, %v1373_v35  ;;  %v4733_v46 = vrot.slane %v4087_v19, 7 }
 0x20b   : > { %v4160_v7 = vmax.f32 %v763_v17, 0.0  ;;  %v738_v36 = vmul.f32 %v2685_v2, %v3953_v16  ;;  %v687_v5 = vpop.f32.mrb[15].mxu0  ;;  %v1371_v47 = vsel %vm1359_vm3, %v1346_v63, %v1347_v24  ;;  %v2022_v17 = vld [vmem:[#allocation13 + $0x60] sm:$0xff]  ;;  %v2023_v2 = vld [vmem:[#allocation13 + $0x68] sm:$0xff]  ;;  %vm4258_vm5 = vcmp.eq.s32.totalorder %v877_v40, 1 }
 0x20c   : > { %4732 = vst [vmem:[#allocation31_spill] sm:$0xff] %v4158_v53  ;;  %v4167_v30 = vsel %vm1359_vm3, %v1347_v24, %v4733_v46  ;;  %v4171_v51 = vmax.f32 %v762_v14, 0.0  ;;  %v737_v45 = vmul.f32 %v3953_v16, %v687_v5  ;;  %v4176_v39 = vsel %vm1420_vm2, %v1410_v60, %v1411_v31 }
 0x20d   : > { %4734 = vst [vmem:[#allocation32_spill] sm:$0xff] %v4167_v30  ;;  %v4180_v35 = vsel %vm1420_vm2, %v1409_v61, %v1410_v60  ;;  %v1349_v46 = vrot.slane %v4136_v18, 7  ;;  %1567 = vrot.lane.b32.xlu1 %v1444_v29, %s3387_s18  ;;  %v765_v63 = vadd.f32 %v3956_v25, %v738_v36  ;;  %v1446_v24 = vmul.f32 %v3994_v13, %v1434_v52 }
 0x20e   : > { %v1413_v14 = vrot.slane %v4160_v7, 1  ;;  %v1352_v5 = vrot.slane %v4160_v7, 7  ;;  %1493 = vrot.lane.b32.xlu0 %v4066_v38, %s3386_s7  ;;  %v764_v61 = vadd.f32 %v3956_v25, %v737_v45  ;;  %v2688_v60 = vpop.f32.mrb[16].mxu0  ;;  %v1412_v30 = vrot.slane %v4171_v51, 1 }
 0x20f   : > { %v4193_v53 = vmul.f32 %v3919_v44, %v1371_v47  ;;  %v4195_v29 = vmax.f32 %v765_v63, 0.0  ;;  %v740_v36 = vmul.f32 %v2688_v60, %v3953_v16  ;;  %v697_v13 = vpop.f32.mrb[17].mxu0  ;;  %v4736_v52 = vrot.slane %v4125_v0, 7 }
 0x210   : > { %v4204_v38 = vpack.c.bf16 %v2023_v2, %v2022_v17  ;;  %v4206_v45 = vmax.f32 %v764_v61, 0.0  ;;  %v739_v12 = vmul.f32 %v3953_v16, %v697_v13  ;;  %v4211_v44 = vsel %vm1420_vm2, %v1412_v30, %v1413_v14 }
 0x211   : > { %4735 = vst [vmem:[#allocation33_spill] sm:$0xff] %v4193_v53  ;;  %v4202_v21 = vsel %vm1359_vm3, %v1349_v46, %v4736_v52  ;;  %v4215_v47 = vsel %vm1420_vm2, %v1411_v31, %v1412_v30  ;;  %v1351_v63 = vrot.slane %v4171_v51, 7  ;;  %v1354_v60 = vrot.slane %v4195_v29, 7  ;;  %1499 = vrot.lane.b32.xlu1 %v4087_v19, %s3386_s7 }
 0x212   : > { %4737 = vst [vmem:[#allocation34_spill] sm:$0xff] %v4202_v21  ;;  %4738 = vst [vmem:[#allocation35_spill] sm:$0xff] %v4204_v38  ;;  %v767_v52 = vadd.f32 %v3956_v25, %v740_v36  ;;  %v1415_v17 = vrot.slane %v4195_v29, 1  ;;  %2825 = vmatprep.subr.bf16.mxu1 %v4204_v38  ;;  %v1353_v2 = vrot.slane %v4206_v45, 7  ;;  %v1414_v61 = vrot.slane %v4206_v45, 1  ;;  %1573 = vrot.lane.b32.xlu0 %v4105_v22, %s3387_s18  ;;  %v2691_v30 = vpop.f32.mrb[18].mxu0 }
 0x213   : > { %v766_v31 = vadd.f32 %v3956_v25, %v739_v12  ;;  %v4739_v13 = vrot.slane %v4087_v19, 7  ;;  %v742_v53 = vmul.f32 %v2691_v30, %v3953_v16  ;;  %v707_v38 = vpop.f32.mrb[19].mxu0  ;;  %v4241_v12 = vsel %vm1359_vm3, %v1351_v63, %v1352_v5 }
 0x214   : > { %v4233_v21 = vmax.f32 %v767_v52, 0.0  ;;  %4740 = vst [vmem:[#allocation36_spill] sm:$0xff] %v4241_v12  ;;  %v741_v22 = vmul.f32 %v3953_v16, %v707_v38  ;;  %v4248_v19 = vsel %vm1420_vm2, %v1413_v14, %v1414_v61 }
 0x215   : > { %v1369_v36 = vsel %vm1359_vm3, %v4739_v13, %v1349_v46  ;;  %v4243_v58 = vmax.f32 %v766_v31, 0.0  ;;  %v4252_v46 = vsel %vm1420_vm2, %v1414_v61, %v1415_v17  ;;  %1571 = vrot.lane.b32.xlu1 %v1446_v24, %s3387_s18  ;;  %v4743_v61 = vrot.slane %v4125_v0, 7 }
 0x216   : > { %v4237_v55 = vmul.f32 %v3924_v48, %v1369_v36  ;;  %v1356_v52 = vrot.slane %v4233_v21, 7  ;;  %v769_v48 = vadd.f32 %v3956_v25, %v742_v53  ;;  %v1417_v30 = vrot.slane %v4233_v21, 1  ;;  %1497 = vrot.lane.b32.xlu0 %v4100_v4, %s3386_s7 }
 0x217   : > { %v1355_v16 = vrot.slane %v4243_v58, 7  ;;  %v1416_v14 = vrot.slane %v4243_v58, 1  ;;  %v768_v38 = vadd.f32 %v3956_v25, %v741_v22  ;;  %v1367_v53 = vsel %vm1359_vm3, %v4743_v61, %v1351_v63 }
 0x218   : > { %v789_v24 = vmax.f32 %v769_v48, 0.0  ;;  %v4272_v40 = vmul.f32 %v3935_v59, %v1367_v53  ;;  %v4276_v13 = vsel %vm1359_vm3, %v1353_v2, %v1354_v60  ;;  %v1365_v36 = vsel %vm1359_vm3, %v1352_v5, %v1353_v2 }
 0x219   : > { %v788_v12 = vmax.f32 %v768_v38, 0.0  ;;  %v1424_v25 = vsel %vm1420_vm2, %v1415_v17, %v1416_v14  ;;  %v1423_v4 = vsel %vm1420_vm2, %v1416_v14, %v1417_v30  ;;  %v4285_v63 = vmul.f32 %v3939_v62, %v1365_v36  ;;  %1503 = vrot.lane.b32.xlu1 %v4125_v0, %s3386_s7 }
 0x21a   : > { %v978_v59 = vsel %vm4258_vm5, 0.0, %v789_v24  ;;  %v1363_v22 = vsel %vm1359_vm3, %v1354_v60, %v1355_v16  ;;  %1577 = vrot.lane.b32.xlu0 %v4141_v37, %s3387_s18  ;;  %v1448_v0 = vmul.f32 %v4039_v20, %v4145_v32  ;;  %v4304_v38 = vsel %vm1359_vm3, %v1355_v16, %v1356_v52 }
 0x21b   : > { %v1358_v5 = vrot.slane %v978_v59, 7  ;;  %v1419_v17 = vrot.slane %v978_v59, 1  ;;  %v977_v2 = vsel %vm4258_vm5, 0.0, %v788_v12  ;;  %v4298_v62 = vmul.f32 %v3943_v3, %v1363_v22 }
 0x21c   : > { %v1357_v48 = vrot.slane %v977_v2, 7  ;;  %v1418_v14 = vrot.slane %v977_v2, 1  ;;  %v4744_v60 = vand.u32 15, %v4051_v43  ;;  %v802_v37 = vadd.s32 88, %v3903_v28 }
 0x21d   : > { %v4745_v31 = vrot.slane %v4007_v27, 1  ;;  %v4746_v12 = vrot.slane %v4007_v27, 7  ;;  %1575 = vrot.lane.b32.xlu1 %v1448_v0, %s3387_s18  ;;  %v4747_v24 = vmov 0.0  }
 0x21e   : > { %vm1288_vm6 = vcmp.ne.s32.totalorder %v4744_v60, 15  ;;  %v1422_v32 = vsel %vm1420_vm2, %v1417_v30, %v1418_v14  ;;  %v1421_v43 = vsel %vm1420_vm2, %v1418_v14, %v1419_v17  ;;  %1501 = vrot.lane.b32.xlu0 %v4136_v18, %s3386_s7  ;;  %v4330_v27 = vsel %vm1359_vm3, %v1357_v48, %v1358_v5  ;;  %v4752_v60 = vld [vmem:[#allocation26_spill] sm:$0xff] }
 0x21f   : > { %v1440_v3 = vsel %vm1420_vm2, %v1419_v17, %v4745_v31  ;;  %v1379_v20 = vsel %vm1359_vm3, %v1358_v5, %v4746_v12  ;;  %v1361_v53 = vsel %vm1359_vm3, %v1356_v52, %v1357_v48  ;;  %v2513_v36 = vsel %vm1288_vm6, 1.0, %v4747_v24  ;;  %v2027_v17 = vld [vmem:[#allocation13 + $0x88] sm:$0xff] }
 0x220   : > { %v1460_v16 = vmul.f32 %v3929_v54, %v1440_v3  ;;  %v4324_v61 = vmul.f32 %v3932_v56, %v1379_v20  ;;  %v4335_v30 = vmul.f32 %v3947_v8, %v1361_v53  ;;  %v1060_v54 = vand.u32 15, %v802_v37  ;;  %v4753_v3 = vld [vmem:[#allocation29_spill] sm:$0xff]  ;;  %v4754_v53 = vld [vmem:[#allocation28_spill] sm:$0xff] }
 0x221   : > { %1507 = vrot.lane.b32.xlu1 %v4160_v7, %s3386_s7  ;;  %v804_v56 = vadd.s32 104, %v3903_v28  ;;  %v1450_v18 = vmul.f32 %v2513_v36, %v4180_v35  ;;  %v806_v8 = vadd.s32 120, %v3903_v28 }
 0x222   : > { %1581 = vrot.lane.b32.xlu0 %v4176_v39, %s3387_s18  ;;  %vm1290_vm7 = vcmp.ne.s32.totalorder %v1060_v54, 15  ;;  %v4755_v54 = vld [vmem:[#allocation31_spill] sm:$0xff] }
 0x223   : > { %v1074_v52 = vand.u32 15, %v804_v56  ;;  %v2514_v22 = vsel %vm1290_vm7, 1.0, %v4747_v24  ;;  %v1088_v7 = vand.u32 15, %v806_v8 }
 0x224   : > { %v1452_v39 = vmul.f32 %v2514_v22, %v4215_v47 }
 0x225   : > { %1579 = vrot.lane.b32.xlu1 %v1450_v18, %s3387_s18  ;;  %vm1292_vm8 = vcmp.ne.s32.totalorder %v1074_v52, 15  ;;  %vm1294_vm9 = vcmp.ne.s32.totalorder %v1088_v7, 15 }
 0x226   : > { %1505 = vrot.lane.b32.xlu0 %v4171_v51, %s3386_s7  ;;  %v2515_v35 = vsel %vm1292_vm8, 1.0, %v4747_v24  ;;  %v2516_v5 = vsel %vm1294_vm9, 1.0, %v4747_v24 }
 0x227   : > { %v1454_v51 = vmul.f32 %v2515_v35, %v4248_v19 }
 0x229   : > { %1511 = vrot.lane.b32.xlu1 %v4195_v29, %s3386_s7  ;;  %v808_v29 = vadd.s32 136, %v3903_v28 }
 0x22a   : > { %1585 = vrot.lane.b32.xlu0 %v4211_v44, %s3387_s18  ;;  %v1456_v44 = vmul.f32 %v2516_v5, %v1424_v25  ;;  %v4757_v5 = vld [vmem:[#allocation33_spill] sm:$0xff] }
 0x22b   : > { %v1102_v47 = vand.u32 15, %v808_v29 }
 0x22d   : > { %1583 = vrot.lane.b32.xlu1 %v1452_v39, %s3387_s18  ;;  %vm1296_vm10 = vcmp.ne.s32.totalorder %v1102_v47, 15  ;;  %v4756_v39 = vld [vmem:[#allocation30_spill] sm:$0xff] }
 0x22e   : > { %1509 = vrot.lane.b32.xlu0 %v4206_v45, %s3386_s7  ;;  %v2517_v45 = vsel %vm1296_vm10, 1.0, %v4747_v24 }
 0x22f   : > { %v1458_v28 = vmul.f32 %v2517_v45, %v1422_v32 }
 0x231   : > { %1587 = vrot.lane.b32.xlu1 %v1454_v51, %s3387_s18 }
 0x232   : > { %1589 = vrot.lane.b32.xlu0 %v4252_v46, %s3387_s18 }
 0x235   : > { %1591 = vrot.lane.b32.xlu1 %v1456_v44, %s3387_s18 }
 0x236   : > { %1513 = vrot.lane.b32.xlu0 %v4243_v58, %s3386_s7 }
 0x239   : > { %1515 = vrot.lane.b32.xlu1 %v4233_v21, %s3386_s7 }
 0x23a   : > { %1593 = vrot.lane.b32.xlu0 %v1423_v4, %s3387_s18 }
 0x23d   : > { %1519 = vrot.lane.b32.xlu1 %v978_v59, %s3386_s7  ;;  %v2026_v59 = vld [vmem:[#allocation13 + $0x80] sm:$0xff] }
 0x23e   : > { %1517 = vrot.lane.b32.xlu0 %v977_v2, %s3386_s7  ;;  %v4751_v2 = vld [vmem:[#allocation35_spill] sm:$0xff]  ;;  %v2832_v48 = vpack.c.bf16 %v2027_v17, %v2026_v59  ;;  %s4762_s7 = sld [smem:[#allocation43_spill]] }
 0x241   : > { %1595 = vrot.lane.b32.xlu1 %v1458_v28, %s3387_s18 }
 0x242   : > { %1597 = vrot.lane.b32.xlu0 %v1421_v43, %s3387_s18 }
 0x245   : > { %1599 = vrot.lane.b32.xlu1 %v1460_v16, %s3387_s18  ;;  %s4578_s18 = scalar_lea.hbm %s4762_s7, %s2570_s3 }
 0x246   : > { %2211 = vrot.lane.b32.xlu0 %v3779_v6, %s3388_s5  ;;  %v4748_v6 = vld [vmem:[#allocation24_spill] sm:$0xff] }
 0x249   : > { %2213 = vrot.lane.b32.xlu1 %v3785_v9, %s3388_s5 }
 0x24a   : > { %2215 = vrot.lane.b32.xlu0 %v3788_v10, %s3388_s5 }
 0x24d   : > { %2217 = vrot.lane.b32.xlu1 %v3791_v11, %s3388_s5 }
 0x24e   : > { %2219 = vrot.lane.b32.xlu0 %v3799_v15, %s3388_s5 }
 0x251   : > { %2221 = vrot.lane.b32.xlu1 %v3810_v23, %s3388_s5 }
 0x252   : > { %2223 = vrot.lane.b32.xlu0 %v3813_v26, %s3388_s5 }
 0x255   : > { %2225 = vrot.lane.b32.xlu1 %v3825_v33, %s3388_s5 }
 0x256   : > { %2227 = vrot.lane.b32.xlu0 %v3828_v34, %s3388_s5 }
 0x259   : > { %2229 = vrot.lane.b32.xlu1 %v3839_v41, %s3388_s5  ;;  %v4749_v41 = vld [vmem:[#allocation27_spill] sm:$0xff] }
 0x25a   : > { %2231 = vrot.lane.b32.xlu0 %v3842_v42, %s3388_s5 }
 0x25d   : > { %2233 = vrot.lane.b32.xlu1 %v3853_v49, %s3388_s5 }
 0x25e   : > { %2235 = vrot.lane.b32.xlu0 %v3856_v50, %s3388_s5  ;;  %v2024_v50 = vld [vmem:[#allocation13 + $0x70] sm:$0xff] }
 0x261   : > { %2237 = vrot.lane.b32.xlu1 %v3867_v57, %s3388_s5  ;;  %v2025_v57 = vld [vmem:[#allocation13 + $0x78] sm:$0xff] }
 0x262   : > { %2239 = vrot.lane.b32.xlu0 %v4748_v6, %s3388_s5  ;;  %v2828_v46 = vpack.c.bf16 %v2025_v57, %v2024_v50 }
 0x265   : > { %2241 = vrot.lane.b32.xlu1 %v3881_v1, %s3388_s5  ;;  %v4750_v1 = vld [vmem:[#allocation25_spill] sm:$0xff]  ;;  %s3240_s5 = scalar_lea.vmem %s4580_s19, 2048 }
 0x266   : > { %p3241_p6 = scmp.ne.s32.totalorder %s4580_s19, %s3240_s5  ;;  %p3248_p13 = scmp.lt.s32.totalorder %s3246_s27, %s3240_s5 }
 0x268   : > { %v1484_v9 = vpop.permute.xlu0 %1483  ;;  %p3242_p12 = pnand %p3241_p6, %p4763_p7  ;;  %p3249_p3 = por %p3248_p13, %p3247_p2 }
 0x269   : > { %v1623_v21 = vsel %vm1621_vm12, %v4750_v1, %v1484_v9  ;;  %v4758_v9 = vld [vmem:[#allocation32_spill] sm:$0xff] }
 0x26a   : > { %p3243_p4 = pneg %p3242_p12 }
 0x26b   : > { %v1488_v10 = vpop.permute.xlu1 %1487 }
 0x26c   : > { %v1482_v11 = vpop.permute.xlu0 %1481  ;;  %v1625_v37 = vsel %vm1621_vm12, %v4752_v60, %v1488_v10  ;;  %p3250_p9 = pnand %p3249_p3, %p3243_p4 }
 0x26d   : > { %v1622_v15 = vsel %vm1621_vm12, %v4324_v61, %v1482_v11 }
 0x26f   : > { %v1562_v23 = vpop.permute.xlu1 %1561 }
 0x270   : > { %v1486_v26 = vpop.permute.xlu0 %1485  ;;  %v1643_v33 = vsel %vm1642_vm11, %v1622_v15, %v1562_v23 }
 0x271   : > { %2740 = vmatprep.mubr.msk.f32.mxu1 %vm1676_vm13, %v1643_v33  ;;  %v1624_v42 = vsel %vm1621_vm12, %v4749_v41, %v1486_v26 }
 0x273   : > { %v1492_v34 = vpop.permute.xlu1 %1491 }
 0x274   : > { %v1566_v49 = vpop.permute.xlu0 %1565  ;;  %v1627_v24 = vsel %vm1621_vm12, %v4754_v53, %v1492_v34 }
 0x275   : > { %v1645_v58 = vsel %vm1642_vm11, %v1624_v42, %v1566_v49  ;;  %v4759_v42 = vld [vmem:[#allocation34_spill] sm:$0xff] }
 0x276   : > { %2704 = vmatprep.mubr.msk.f32.mxu0 %vm1676_vm13, %v1645_v58 }
 0x277   : > { %v1564_v19 = vpop.permute.xlu1 %1563 }
 0x278   : > { %v1644_v25 = vsel %vm1642_vm11, %v1623_v21, %v1564_v19  ;;  %v1490_v4 = vpop.permute.xlu0 %1489  ;;  %v4760_v21 = vld [vmem:[#allocation36_spill] sm:$0xff] }
 0x279   : > { %2741 = vmatmul.mubr.msk.f32.vlgmr.msra.gmra.mrb[0].mxu1 %vm1676_vm13, %v1644_v25  ;;  %v1626_v12 = vsel %vm1621_vm12, %v4753_v3, %v1490_v4 }
 0x27a   : > { %2743 = vmatprep.mubr.msk.f32.mxu1 %vm1676_vm13, %v1645_v58  ;;  %2827 = vmatpush3.bf16.msra.mxu1 %v4751_v2 }
 0x27b   : > { %v1496_v0 = vpop.permute.xlu1 %1495  ;;  %2829 = vmatprep.subr.bf16.mxu1 %v2828_v46 }
 0x27c   : > { %v1570_v14 = vpop.permute.xlu0 %1569  ;;  %v1629_v35 = vsel %vm1621_vm12, %v4756_v39, %v1496_v0 }
 0x27d   : > { %v4412_v43 = vsel %vm1642_vm11, %v1626_v12, %v1570_v14 }
 0x27e   : > { %2831 = vmatpush3.bf16.msra.mxu1 %v2828_v46 }
 0x27f   : > { %v1568_v31 = vpop.permute.xlu1 %1567  ;;  %2833 = vmatprep.subr.bf16.mxu1 %v2832_v48 }
 0x280   : > { %v1646_v20 = vsel %vm1642_vm11, %v1625_v37, %v1568_v31  ;;  %v1494_v32 = vpop.permute.xlu0 %1493 }
 0x281   : > { %2705 = vmatmul.mubr.msk.f32.vlgmr.msra.gmra.mrb[20].mxu0 %vm1676_vm13, %v1646_v20  ;;  %2744 = vmatmul.mubr.msk.f32.gmra.mrb[2].mxu1 %vm1676_vm13, %v1646_v20  ;;  %v1628_v56 = vsel %vm1621_vm12, %v4755_v54, %v1494_v32 }
 0x282   : > { %2707 = vmatprep.mubr.msk.f32.mxu0 %vm1676_vm13, %v4412_v43  ;;  %2746 = vmatprep.mubr.msk.f32.mxu1 %vm1676_vm13, %v4412_v43 }
 0x283   : > { %v1500_v16 = vpop.permute.xlu1 %1499  ;;  %2835 = vmatpush3.bf16.msra.mxu1 %v2832_v48 }
 0x284   : > { %v1574_v61 = vpop.permute.xlu0 %1573  ;;  %v1631_v10 = vsel %vm1621_vm12, %v4758_v9, %v1500_v16 }
 0x285   : > { %v4428_v8 = vsel %vm1642_vm11, %v1628_v56, %v1574_v61 }
 0x287   : > { %v1572_v36 = vpop.permute.xlu1 %1571 }
 0x288   : > { %v4425_v18 = vsel %vm1642_vm11, %v1627_v24, %v1572_v36  ;;  %v1498_v52 = vpop.permute.xlu0 %1497 }
 0x289   : > { %2708 = vmatmul.mubr.msk.f32.gmra.mrb[22].mxu0 %vm1676_vm13, %v4425_v18  ;;  %2747 = vmatmul.mubr.msk.f32.gmra.mrb[4].mxu1 %vm1676_vm13, %v4425_v18  ;;  %v1630_v29 = vsel %vm1621_vm12, %v4757_v5, %v1498_v52 }
 0x28a   : > { %2710 = vmatprep.mubr.msk.f32.mxu0 %vm1676_vm13, %v4428_v8  ;;  %2749 = vmatprep.mubr.msk.f32.mxu1 %vm1676_vm13, %v4428_v8 }
 0x28b   : > { %v1504_v22 = vpop.permute.xlu1 %1503 }
 0x28c   : > { %v1578_v7 = vpop.permute.xlu0 %1577  ;;  %v1633_v49 = vsel %vm1621_vm12, %v4759_v42, %v1504_v22 }
 0x28d   : > { %v1651_v45 = vsel %vm1642_vm11, %v1630_v29, %v1578_v7 }
 0x28f   : > { %v1576_v51 = vpop.permute.xlu1 %1575 }
 0x290   : > { %v1650_v44 = vsel %vm1642_vm11, %v1629_v35, %v1576_v51  ;;  %v1502_v47 = vpop.permute.xlu0 %1501 }
 0x291   : > { %2711 = vmatmul.mubr.msk.f32.gmra.mrb[24].mxu0 %vm1676_vm13, %v1650_v44  ;;  %2750 = vmatmul.mubr.msk.f32.gmra.mrb[6].mxu1 %vm1676_vm13, %v1650_v44  ;;  %v1632_v15 = vsel %vm1621_vm12, %v4237_v55, %v1502_v47 }
 0x292   : > { %2713 = vmatprep.mubr.msk.f32.mxu0 %vm1676_vm13, %v1651_v45  ;;  %2752 = vmatprep.mubr.msk.f32.mxu1 %vm1676_vm13, %v1651_v45 }
 0x293   : > { %v1508_v28 = vpop.permute.xlu1 %1507 }
 0x294   : > { %v1582_v6 = vpop.permute.xlu0 %1581  ;;  %v1635_v19 = vsel %vm1621_vm12, %v4760_v21, %v1508_v28 }
 0x295   : > { %v1653_v33 = vsel %vm1642_vm11, %v1632_v15, %v1582_v6 }
 0x297   : > { %v1580_v11 = vpop.permute.xlu1 %1579 }
 0x298   : > { %v1652_v23 = vsel %vm1642_vm11, %v1631_v10, %v1580_v11  ;;  %v1506_v26 = vpop.permute.xlu0 %1505 }
 0x299   : > { %2714 = vmatmul.mubr.msk.f32.gmra.mrb[26].mxu0 %vm1676_vm13, %v1652_v23  ;;  %2753 = vmatmul.mubr.msk.f32.gmra.mrb[8].mxu1 %vm1676_vm13, %v1652_v23  ;;  %v1634_v55 = vsel %vm1621_vm12, %v4272_v40, %v1506_v26 }
 0x29a   : > { %2716 = vmatprep.mubr.msk.f32.mxu0 %vm1676_vm13, %v1653_v33  ;;  %2755 = vmatprep.mubr.msk.f32.mxu1 %vm1676_vm13, %v1653_v33 }
 0x29b   : > { %v1512_v34 = vpop.permute.xlu1 %1511 }
 0x29c   : > { %v1586_v41 = vpop.permute.xlu0 %1585  ;;  %v1637_v17 = vsel %vm1621_vm12, %v4276_v13, %v1512_v34 }
 0x29d   : > { %v1655_v1 = vsel %vm1642_vm11, %v1634_v55, %v1586_v41 }
 0x29f   : > { %v1584_v50 = vpop.permute.xlu1 %1583 }
 0x2a0   : > { %v1654_v57 = vsel %vm1642_vm11, %v1633_v49, %v1584_v50  ;;  %v1510_v58 = vpop.permute.xlu0 %1509 }
 0x2a1   : > { %2717 = vmatmul.mubr.msk.f32.gmra.mrb[28].mxu0 %vm1676_vm13, %v1654_v57  ;;  %2756 = vmatmul.mubr.msk.f32.gmra.mrb[10].mxu1 %vm1676_vm13, %v1654_v57  ;;  %v1636_v40 = vsel %vm1621_vm12, %v4285_v63, %v1510_v58 }
 0x2a2   : > { %2719 = vmatprep.mubr.msk.f32.mxu0 %vm1676_vm13, %v1655_v1  ;;  %2758 = vmatprep.mubr.msk.f32.mxu1 %vm1676_vm13, %v1655_v1 }
 0x2a3   : > { %v1588_v46 = vpop.permute.xlu1 %1587 }
 0x2a4   : > { %v1656_v25 = vsel %vm1642_vm11, %v1635_v19, %v1588_v46  ;;  %v1590_v4 = vpop.permute.xlu0 %1589 }
 0x2a5   : > { %v1657_v59 = vsel %vm1642_vm11, %v1636_v40, %v1590_v4  ;;  %2720 = vmatmul.mubr.msk.f32.gmra.mrb[30].mxu0 %vm1676_vm13, %v1656_v25  ;;  %2759 = vmatmul.mubr.msk.f32.gmra.mrb[12].mxu1 %vm1676_vm13, %v1656_v25 }
 0x2a6   : > { %2722 = vmatprep.mubr.msk.f32.mxu0 %vm1676_vm13, %v1657_v59  ;;  %2761 = vmatprep.mubr.msk.f32.mxu1 %vm1676_vm13, %v1657_v59 }
 0x2a7   : > { %v1592_v2 = vpop.permute.xlu1 %1591 }
 0x2a8   : > { %v1658_v0 = vsel %vm1642_vm11, %v1637_v17, %v1592_v2  ;;  %v1514_v63 = vpop.permute.xlu0 %1513 }
 0x2a9   : > { %2723 = vmatmul.mubr.msk.f32.gmra.mrb[32].mxu0 %vm1676_vm13, %v1658_v0  ;;  %2762 = vmatmul.mubr.msk.f32.gmra.mrb[14].mxu1 %vm1676_vm13, %v1658_v0  ;;  %v1638_v14 = vsel %vm1621_vm12, %v4298_v62, %v1514_v63 }
 0x2aa   : > { %2776 = vmatprep.mubr.msk.f32.mxu1 %vm1676_vm13, %v4412_v43 }
 0x2ab   : > { %v1516_v48 = vpop.permute.xlu1 %1515 }
 0x2ac   : > { %v1594_v60 = vpop.permute.xlu0 %1593  ;;  %v1639_v31 = vsel %vm1621_vm12, %v4304_v38, %v1516_v48 }
 0x2ad   : > { %v1659_v37 = vsel %vm1642_vm11, %v1638_v14, %v1594_v60  ;;  %2777 = vmatmul.mubr.msk.f32.vlgmr.msra.gmra.mrb[0].mxu1 %vm1676_vm13, %v4425_v18 }
 0x2ae   : > { %2725 = vmatprep.mubr.msk.f32.mxu0 %vm1676_vm13, %v1659_v37  ;;  %2779 = vmatprep.mubr.msk.f32.mxu1 %vm1676_vm13, %v4428_v8 }
 0x2af   : > { %v1520_v13 = vpop.permute.xlu1 %1519 }
 0x2b0   : > { %v1518_v12 = vpop.permute.xlu0 %1517  ;;  %v1641_v16 = vsel %vm1621_vm12, %v4330_v27, %v1520_v13 }
 0x2b1   : > { %2780 = vmatmul.mubr.msk.f32.gmra.mrb[2].mxu1 %vm1676_vm13, %v1650_v44  ;;  %v1640_v20 = vsel %vm1621_vm12, %v4335_v30, %v1518_v12 }
 0x2b2   : > { %2782 = vmatprep.mubr.msk.f32.mxu1 %vm1676_vm13, %v1651_v45 }
 0x2b3   : > { %v1596_v62 = vpop.permute.xlu1 %1595 }
 0x2b4   : > { %v1660_v3 = vsel %vm1642_vm11, %v1639_v31, %v1596_v62  ;;  %v1598_v38 = vpop.permute.xlu0 %1597 }
 0x2b5   : > { %2726 = vmatmul.mubr.msk.f32.gmra.mrb[34].mxu0 %vm1676_vm13, %v1660_v3  ;;  %2783 = vmatmul.mubr.msk.f32.gmra.mrb[4].mxu1 %vm1676_vm13, %v1652_v23  ;;  %v1661_v32 = vsel %vm1642_vm11, %v1640_v20, %v1598_v38 }
 0x2b6   : > { %2785 = vmatprep.mubr.msk.f32.mxu1 %vm1676_vm13, %v1653_v33 }
 0x2b7   : > { %v1600_v43 = vpop.permute.xlu1 %1599 }
 0x2b8   : > { %v1662_v61 = vsel %vm1642_vm11, %v1641_v16, %v1600_v43  ;;  %v2212_v22 = vpop.permute.xlu0 %2211 }
 0x2b9   : > { %2786 = vmatmul.mubr.msk.f32.gmra.mrb[6].mxu1 %vm1676_vm13, %v1654_v57 }
 0x2ba   : > { %2788 = vmatprep.mubr.msk.f32.mxu1 %vm1676_vm13, %v1655_v1 }
 0x2bb   : > { %v2214_v8 = vpop.permute.xlu1 %2213 }
 0x2bc   : > { %v2216_v5 = vpop.permute.xlu0 %2215 }
 0x2bd   : > { %2789 = vmatmul.mubr.msk.f32.gmra.mrb[8].mxu1 %vm1676_vm13, %v1656_v25 }
 0x2be   : > { %2791 = vmatprep.mubr.msk.f32.mxu1 %vm1676_vm13, %v1657_v59 }
 0x2bf   : > { %v2218_v27 = vpop.permute.xlu1 %2217 }
 0x2c0   : > { %v2220_v45 = vpop.permute.xlu0 %2219 }
 0x2c1   : > { %2792 = vmatmul.mubr.msk.f32.gmra.mrb[10].mxu1 %vm1676_vm13, %v1658_v0 }
 0x2c2   : > { %2794 = vmatprep.mubr.msk.f32.mxu1 %vm1676_vm13, %v1659_v37 }
 0x2c3   : > { %v2222_v47 = vpop.permute.xlu1 %2221 }
 0x2c4   : > { %v2224_v41 = vpop.permute.xlu0 %2223 }
 0x2c5   : > { %2795 = vmatmul.mubr.msk.f32.gmra.mrb[12].mxu1 %vm1676_vm13, %v1660_v3 }
 0x2c6   : > { %2797 = vmatprep.mubr.msk.f32.mxu1 %vm1676_vm13, %v1661_v32 }
 0x2c7   : > { %v2226_v26 = vpop.permute.xlu1 %2225 }
 0x2c8   : > { %v2228_v25 = vpop.permute.xlu0 %2227 }
 0x2c9   : > { %2798 = vmatmul.mubr.msk.f32.gmra.mrb[14].mxu1 %vm1676_vm13, %v1662_v61 }
 0x2cb   : > { %v2230_v46 = vpop.permute.xlu1 %2229 }
 0x2cc   : > { %v2232_v31 = vpop.permute.xlu0 %2231 }
 0x2cf   : > { %v2234_v60 = vpop.permute.xlu1 %2233 }
 0x2d3   : > { %v2238_v16 = vpop.permute.xlu1 %2237 }
 0x354   : > { %v2706_v53 = vpop.f32.mrb[20].mxu0 }
 0x355   : > { %v1791_v24 = vpop.f32.mrb[21].mxu0 }
 0x35c   : > { %v2709_v36 = vpop.f32.mrb[22].mxu0 }
 0x35d   : > { %v1801_v54 = vpop.f32.mrb[23].mxu0 }
 0x364   : > { %v2712_v30 = vpop.f32.mrb[24].mxu0 }
 0x365   : > { %v1811_v56 = vpop.f32.mrb[25].mxu0 }
 0x36c   : > { %v2715_v18 = vpop.f32.mrb[26].mxu0 }
 0x36d   : > { %v1821_v52 = vpop.f32.mrb[27].mxu0 }
 0x374   : > { %v2718_v7 = vpop.f32.mrb[28].mxu0 }
 0x375   : > { %v1831_v39 = vpop.f32.mrb[29].mxu0 }
 0x378   : > { %v2721_v35 = vpop.f32.mrb[30].mxu0 }
 0x379   : > { %v4516_v51 = vpop.f32.mrb[31].mxu0 }
 0x37c   : > { %v4519_v29 = vpop.f32.mrb[32].mxu0 }
 0x37d   : > { %v4521_v44 = vpop.f32.mrb[33].mxu0 }
 0x380   : > { %v2778_v28 = vpop.f32.mrb[0].mxu1 }
 0x381   : > { %v2836_v6 = vadd.f32 %v2778_v28, %v2706_v53  ;;  %v2100_v9 = vpop.f32.mrb[1].mxu1  ;;  %v2236_v53 = vpop.permute.xlu0 %2235 }
 0x382   : > { %v2837_v10 = vadd.f32 %v2100_v9, %v1791_v24 }
 0x383   : > { %v2260_v11 = vsel %vm486_vm1, %v2836_v6, %v2214_v8 }
 0x384   : > { %2277 = vst.msk [vmem:[%s4526_s20 + $0x8] sm:$0xff] %vm2275_vm14, %v2260_v11  ;;  %v2259_v15 = vsel %vm486_vm1, %v2837_v10, %v2212_v22  ;;  %v2781_v23 = vpop.f32.mrb[2].mxu1  ;;  %v2242_v22 = vpop.permute.xlu1 %2241 }
 0x385   : > { %2276 = vst.msk [vmem:[%s4526_s20] sm:$0xff] %vm2275_vm14, %v2259_v15  ;;  %v2838_v33 = vadd.f32 %v2781_v23, %v2709_v36  ;;  %v2110_v34 = vpop.f32.mrb[3].mxu1 }
 0x386   : > { %v2839_v42 = vadd.f32 %v2110_v34, %v1801_v54 }
 0x387   : > { %v2262_v49 = vsel %vm486_vm1, %v2838_v33, %v2218_v27 }
 0x388   : > { %2279 = vst.msk [vmem:[%s4526_s20 + $0x18] sm:$0xff] %vm2275_vm14, %v2262_v49  ;;  %v2261_v50 = vsel %vm486_vm1, %v2839_v42, %v2216_v5  ;;  %v2727_v55 = vpop.f32.mrb[34].mxu0  ;;  %v2784_v57 = vpop.f32.mrb[4].mxu1 }
 0x389   : > { %2278 = vst.msk [vmem:[%s4526_s20 + $0x10] sm:$0xff] %vm2275_vm14, %v2261_v50  ;;  %v2840_v58 = vadd.f32 %v2784_v57, %v2712_v30  ;;  %v1861_v1 = vpop.f32.mrb[35].mxu0  ;;  %v2120_v21 = vpop.f32.mrb[5].mxu1 }
 0x38a   : > { %v2841_v19 = vadd.f32 %v2120_v21, %v1811_v56 }
 0x38b   : > { %v2264_v40 = vsel %vm486_vm1, %v2840_v58, %v2222_v47 }
 0x38c   : > { %2281 = vst.msk [vmem:[%s4526_s20 + $0x28] sm:$0xff] %vm2275_vm14, %v2264_v40  ;;  %v2263_v4 = vsel %vm486_vm1, %v2841_v19, %v2220_v45  ;;  %v2787_v59 = vpop.f32.mrb[6].mxu1 }
 0x38d   : > { %2280 = vst.msk [vmem:[%s4526_s20 + $0x20] sm:$0xff] %vm2275_vm14, %v2263_v4  ;;  %v2842_v17 = vadd.f32 %v2787_v59, %v2715_v18  ;;  %v2130_v2 = vpop.f32.mrb[7].mxu1 }
 0x38e   : > { %v2843_v0 = vadd.f32 %v2130_v2, %v1821_v52 }
 0x38f   : > { %v2266_v63 = vsel %vm486_vm1, %v2842_v17, %v2226_v26 }
 0x390   : > { %2283 = vst.msk [vmem:[%s4526_s20 + $0x38] sm:$0xff] %vm2275_vm14, %v2266_v63  ;;  %v2265_v48 = vsel %vm486_vm1, %v2843_v0, %v2224_v41  ;;  %v2790_v14 = vpop.f32.mrb[8].mxu1 }
 0x391   : > { %2282 = vst.msk [vmem:[%s4526_s20 + $0x30] sm:$0xff] %vm2275_vm14, %v2265_v48  ;;  %v2844_v37 = vadd.f32 %v2790_v14, %v2718_v7  ;;  %v2140_v13 = vpop.f32.mrb[9].mxu1 }
 0x392   : > { %v2845_v62 = vadd.f32 %v2140_v13, %v1831_v39 }
 0x393   : > { %v2268_v3 = vsel %vm486_vm1, %v2844_v37, %v2230_v46 }
 0x394   : > { %2285 = vst.msk [vmem:[%s4526_s20 + $0x48] sm:$0xff] %vm2275_vm14, %v2268_v3  ;;  %v2267_v12 = vsel %vm486_vm1, %v2845_v62, %v2228_v25  ;;  %v2793_v38 = vpop.f32.mrb[10].mxu1 }
 0x395   : > { %2284 = vst.msk [vmem:[%s4526_s20 + $0x40] sm:$0xff] %vm2275_vm14, %v2267_v12  ;;  %v2846_v20 = vadd.f32 %v2793_v38, %v2721_v35  ;;  %v2150_v32 = vpop.f32.mrb[11].mxu1  ;;  %v2240_v35 = vpop.permute.xlu0 %2239 }
 0x396   : > { %v2847_v43 = vadd.f32 %v2150_v32, %v4516_v51 }
 0x397   : > { %v2270_v61 = vsel %vm486_vm1, %v2846_v20, %v2234_v60 }
 0x398   : > { %2287 = vst.msk [vmem:[%s4526_s20 + $0x58] sm:$0xff] %vm2275_vm14, %v2270_v61  ;;  %v2269_v24 = vsel %vm486_vm1, %v2847_v43, %v2232_v31  ;;  %v2796_v36 = vpop.f32.mrb[12].mxu1 }
 0x399   : > { %2286 = vst.msk [vmem:[%s4526_s20 + $0x50] sm:$0xff] %vm2275_vm14, %v2269_v24  ;;  %v2848_v54 = vadd.f32 %v2796_v36, %v4519_v29  ;;  %v2160_v30 = vpop.f32.mrb[13].mxu1 }
 0x39a   : > { %v2849_v56 = vadd.f32 %v2160_v30, %v4521_v44 }
 0x39b   : > { %v2272_v18 = vsel %vm486_vm1, %v2848_v54, %v2238_v16 }
 0x39c   : > { %2289 = vst.msk [vmem:[%s4526_s20 + $0x68] sm:$0xff] %vm2275_vm14, %v2272_v18  ;;  %v2271_v52 = vsel %vm486_vm1, %v2849_v56, %v2236_v53  ;;  %v2799_v8 = vpop.f32.mrb[14].mxu1 }
 0x39d   : > { %2288 = vst.msk [vmem:[%s4526_s20 + $0x60] sm:$0xff] %vm2275_vm14, %v2271_v52  ;;  %v2850_v7 = vadd.f32 %v2799_v8, %v2727_v55  ;;  %v2170_v39 = vpop.f32.mrb[15].mxu1 }
 0x39e   : > { %v2851_v27 = vadd.f32 %v2170_v39, %v1861_v1 }
 0x39f   : > { %v2274_v51 = vsel %vm486_vm1, %v2850_v7, %v2242_v22 }
 0x3a0   : > { %2291 = vst.msk [vmem:[%s4526_s20 + $0x78] sm:$0xff] %vm2275_vm14, %v2274_v51  ;;  %v2273_v5 = vsel %vm486_vm1, %v2851_v27, %v2240_v35 }
 0x3a1   : > { %2290 = vst.msk [vmem:[%s4526_s20 + $0x70] sm:$0xff] %vm2275_vm14, %v2273_v5 }
 0x3a2   : > { %3253 = shalt.err (!%p3250_p9)
}
 0x3a3   : > { %s3254_s4 = scalar_lea.hbm %s4578_s18, 2048  ;;  %s3258_s16 = scalar_lea.hbm %s4762_s7, 8192 }
 0x3a4   : > { %p3255_p10 = scmp.ne.s32.totalorder %s4578_s18, %s3254_s4  ;;  %p3259_p8 = scmp.lt.u32.totalorder %s4578_s18, %s4762_s7 }
 0x3a5   : > { %p3260_p5 = scmp.lt.u32.totalorder %s3258_s16, %s3254_s4  ;;  %p3262_p6 = scmp.lt.u32.totalorder %s3254_s4, %s4578_s18 }
 0x3a6   : > { %p3256_p11 = pnand %p3255_p10, %p4763_p7 }
 0x3a7   : > { %p3261_p1 = por %p3260_p5, %p3259_p8 }
 0x3a8   : > { %p3257_p0 = pneg %p3256_p11 }
 0x3a9   : > { %p3263_p12 = por %p3262_p6, %p3261_p1 }
 0x3ab   : > { %p3264_p4 = pnand %p3263_p12, %p3257_p0 }
 0x3ad   : > { %3267 = shalt.err (!%p3264_p4)
}
 0x3ae   : > { %s3390_s13 = smov 128   ;;  %s3391_s5 = smov 8  }
 0x3af   : > { %2897 = dma.vmem_to_hbm [thread:$0]  (%p4763_p7), %s4580_s19, 2048, %s4578_s18, %s4590_s22, %s3390_s13, %s3390_s13, %s3391_s5  }
 0x3b0 PF: > { %p2939_p2 = scmp.ge.s32.totalorder %s3374_s11, 2  ;;  %s2323_s1 = sand.u32 1, %s3334_s24  }
 0x3b1   : > { %p4764_p13 = scmp.ne.s32.totalorder %s4704_s8, 0  ;;  %s2324_s17 = scalar_lea.sflag [#allocation4], %s2323_s1 }
 0x3b3   : > { %p2923_p3 = pnand %p2939_p2, %p4764_p13 }
 0x3b5   : > { %3329 = dma.done.wait (!%p2923_p3), %s2324_s17, 2048  }
 0x3b6   : > { %3331 = vsyncadd (!%p2923_p3), %s2324_s17, 4294965248  ;;  %s26_s11 = sadd.s32 1, %s3374_s11   ;;  %s4765_s24 = smov %s3338_s25 }
 0x3b7   : > { %p23_p9 = scmp.ge.s32.totalorder %s26_s11, 6   ;;  %s4766_s25 = smov %s3342_s26 }
 0x3b8   : > { %s4767_s26 = smov %s3696_s14  ;;  %s4768_s27 = smov %s3350_s28 }
 0x3b9   : > { %s4769_s28 = smov %s3354_s29  ;;  %s4770_s29 = smov %s3693_s0 }
 0x3ba   : > { %s4771_s30 = smov %s3366_s9  ;;  %s4772_s8 = smov %s3370_s10 }
 0x3bb   : > { %s4773_s9 = smov %s4776_s21  ;;  %s4774_s10 = smov %s4780_s23 }
 0x3bc   :  { %25 = sbr.rel (!%p23_p9) target bundleno = 20 (0x14), region = 120 }
 0x3c3   :  { %2329 = vsyncpa [#allocation3], 1 }
 0x3c4   :  { %2331 = vsyncpa [#allocation3 + $0x1], 1 }
 0x3c5   :  { %2332 = vsyncpa [#allocation6], 1 }
 0x3c6   :  { %2333 = vsyncpa [#allocation9], 1 }
 0x3c7   :  { %2334 = vsyncpa [#allocation12], 1 }
 0x3c8   :  { %2335 = vsyncpa [#allocation4], 1 }
 0x3c9   :  { %2337 = vsyncpa [#allocation4 + $0x1], 1 }

</bundles_post_ra>
